<compile_context>
chip_gen: v6e
topology: v6e:2x2x1
jax: 0.10.0
libtpu: 0.0.40
codegen_flags: <defaults>
</compile_context>

<pallas_src>
import functools

import jax
import jax.numpy as jnp
import numpy as np
from jax.experimental import pallas as pl
from jax.experimental.pallas import tpu as pltpu


OUT_CHANNELS = 64


def _round_up(x, m):
    return ((x + m - 1) // m) * m


# --------------------------------------------------------------------------
# Fused kernel: conv1 + ReLU + conv2 + ReLU + channel softmax for B images.
# --------------------------------------------------------------------------
def _projector_kernel(p_ref, w1_ref, b1_ref, w2_ref, b2_ref, o_ref, act_ref,
                      *, fs, kh, kw):
    # p_ref  : (M, K1)  conv1 im2col patches for the (H1, FS) frame, M = B*H1*FS,
    #                   last-dim order (dy, dx, cin)
    # w1_ref : (K1, 64) conv1 weights, rows ordered (dy, dx, cin)   [VMEM resident]
    # b1_ref : (1, 64)
    # w2_ref : (kh*kw*64, 64) conv2 weights, rows ordered (dy, dx, c)
    # b2_ref : (1, 64)
    # o_ref  : (M, 64)  conv2+softmax on the (H1, FS) frame; ghost rows/cols are
    #                   finite garbage, sliced away by the wrapper.
    # act_ref: VMEM (M + tail, 64) scratch for the conv1 activation frame.
    M, C = o_ref.shape
    tail = act_ref.shape[0] - M

    # ---- conv1 + bias + ReLU: one MXU matmul (K = kh*kw*Cin) over all B images ----
    a1 = jnp.dot(p_ref[...], w1_ref[...], preferred_element_type=jnp.float32)
    act_ref[pl.ds(0, M), :] = jnp.maximum(a1 + b1_ref[...], 0.0)
    # Zero the tail so the largest tap shift stays in-bounds and finite.
    act_ref[pl.ds(M, tail), :] = jnp.zeros((tail, C), jnp.float32)

    # ---- conv2: 9 direct K=64 tap matmuls, single f32 acc chain (no concat) ----
    # Flat-shift trick: tap (dy, dx) of output frame row q reads act row q+dy*fs+dx.
    acc = None
    t = 0
    for dy in range(kh):
        for dx in range(kw):
            shift = dy * fs + dx                       # static; dy*fs is 8-aligned
            d = jnp.dot(act_ref[pl.ds(shift, M), :],
                        w2_ref[pl.ds(t * C, C), :],
                        preferred_element_type=jnp.float32)
            acc = d if acc is None else acc + d
            t += 1
    z = jnp.maximum(acc + b2_ref[...], 0.0)

    # ---- softmax over the channel (lane) axis ----
    m = jnp.max(z, axis=-1, keepdims=True)
    e = jnp.exp(z - m)
    s = jnp.sum(e, axis=-1, keepdims=True)             # >= 1, safe for approx recip
    o_ref[...] = (e * pl.reciprocal(s, approx=True)).astype(o_ref.dtype)


# --------------------------------------------------------------------------
# Wrapper (layout plumbing only, all inside the same jit)
# --------------------------------------------------------------------------
def _im2col_nhwc(x, kh, kw):
    """x: (N,H,W,C) -> (N, Ho*Wo, kh*kw*C); last-dim ordering (dy, dx, c)."""
    N, H, W, C = x.shape
    Ho, Wo = H - kh + 1, W - kw + 1
    cols = [x[:, dy:dy + Ho, dx:dx + Wo, :]
            for dy in range(kh) for dx in range(kw)]
    return jnp.concatenate(cols, axis=-1).reshape(N, Ho * Wo, kh * kw * C)


def projector_forward(x_nchw, params):
    """x_nchw: (N, Cin, H, W). Returns softmax(conv stack(x), dim=1) in NCHW."""
    (w1, b1), (w2, b2) = params
    kh, kw = w1.shape[0], w1.shape[1]
    N, Cin, H, W = x_nchw.shape
    C = OUT_CHANNELS
    H1, W1 = H - kh + 1, W - kw + 1          # conv1 output frame (valid part)
    H2, W2 = H1 - kh + 1, W1 - kw + 1        # conv2 valid output
    FS = _round_up(W1, 8)                    # padded frame stride (sublane aligned)
    FRAME = H1 * FS                          # flat rows per image in the frame
    TAIL = _round_up((kh - 1) * FS + (kw - 1), 8)
    K1 = kh * kw * Cin
    K2 = kh * kw * C

    # B images per grid step; keep >= 2 grid blocks so both v7x TCs stay busy.
    B = max(1, min(8, N // 2))
    G = pl.cdiv(N, B)
    Np = G * B
    MB = B * FRAME                           # matmul M rows per grid step

    x_nhwc = jnp.transpose(x_nchw, (0, 2, 3, 1))
    if Np != N:                              # pad batch with zero images
        x_nhwc = jnp.concatenate(
            [x_nhwc, jnp.zeros((Np - N, H, W, Cin), x_nhwc.dtype)], axis=0)
    # Pad width so conv1 patches exist for the full (H1, FS) frame (ghost columns).
    pad_w = FS + kw - 1 - W
    if pad_w > 0:
        x_nhwc = jnp.pad(x_nhwc, ((0, 0), (0, 0), (0, pad_w), (0, 0)))

    patches = _im2col_nhwc(x_nhwc, kh, kw)               # (Np, FRAME, K1)
    patches = patches.reshape(Np * FRAME, K1)            # lane-dim = K1
    w1f = w1.reshape(K1, C)
    w2f = w2.reshape(K2, C)
    b1r = b1.reshape(1, C)
    b2r = b2.reshape(1, C)

    cost = pl.CostEstimate(
        flops=2 * Np * FRAME * C * (K1 + K2),
        transcendentals=Np * FRAME * C,
        bytes_accessed=4 * (patches.size + Np * FRAME * C
                            + w1f.size + w2f.size + 2 * C))

    kern = functools.partial(_projector_kernel, fs=FS, kh=kh, kw=kw)
    out = pl.pallas_call(
        kern,
        out_shape=jax.ShapeDtypeStruct((Np * FRAME, C), jnp.float32),
        grid=(G,),
        in_specs=[
            pl.BlockSpec((MB, K1), lambda i: (i, 0)),                   # patches
            pl.BlockSpec(memory_space=pltpu.MemorySpace.VMEM),          # w1 (resident)
            pl.BlockSpec(memory_space=pltpu.MemorySpace.VMEM),          # b1
            pl.BlockSpec(memory_space=pltpu.MemorySpace.VMEM),          # w2
            pl.BlockSpec(memory_space=pltpu.MemorySpace.VMEM),          # b2
        ],
        out_specs=pl.BlockSpec((MB, C), lambda i: (i, 0)),
        scratch_shapes=[pltpu.VMEM((MB + TAIL, C), jnp.float32)],
        compiler_params=pltpu.CompilerParams(
            dimension_semantics=("parallel",)),
        cost_estimate=cost,
    )(patches, w1f, b1r, w2f, b2r)

    # Drop ghost frame positions / batch padding, back to NCHW.
    out = out.reshape(Np, H1, FS, C)[:N, :H2, :W2, :]
    return jnp.transpose(out, (0, 3, 1, 2))              # (N, 64, H2, W2)


# --------------------------------------------------------------------------
# Parameter init + pure-JAX reference
# --------------------------------------------------------------------------
def init_params(key, structure, input_channels):
    """Deterministic Conv2d params (PyTorch default uniform bounds), HWIO layout."""
    assert structure['type'].startswith('conv2d')
    assert structure['activation'] == 'relu'
    # TODO(synk): BatchNorm2d path (structure['batchnorm']=True) not implemented;
    # this config uses batchnorm=False so it is not exercised.
    assert not structure['batchnorm']
    ksize = int(structure['type'][-1])
    cin = input_channels
    params = []
    for _ in range(structure['num']):
        key, kw_, kb_ = jax.random.split(key, 3)
        fan_in = cin * ksize * ksize
        bound = 1.0 / np.sqrt(fan_in)
        w = jax.random.uniform(kw_, (ksize, ksize, cin, OUT_CHANNELS),
                               jnp.float32, -bound, bound)   # HWIO
        b = jax.random.uniform(kb_, (OUT_CHANNELS,), jnp.float32, -bound, bound)
        params.append((w, b))
        cin = OUT_CHANNELS
    return params


def reference_forward(x_nchw, params):
    """Pure-JAX reference: conv stack + ReLU, then softmax over channels."""
    y = jnp.transpose(x_nchw, (0, 2, 3, 1))
    for (w, b) in params:
        y = jax.lax.conv_general_dilated(
            y, w, window_strides=(1, 1), padding='VALID',
            dimension_numbers=('NHWC', 'HWIO', 'NHWC'))
        y = jax.nn.relu(y + b)
    y = jax.nn.softmax(y, axis=-1)            # channel axis == dim=1 in NCHW
    return jnp.transpose(y, (0, 3, 1, 2))


if __name__ == "__main__":
    config = {'structure': {'type': 'conv2d3', 'num': 2,
                            'activation': 'relu', 'batchnorm': False}}
    n_way = 2                                  # Projector stores n_way; unused in forward
    N, input_channels, H, W = 2, 4, 16, 16

    key = jax.random.PRNGKey(0)
    kx, kp = jax.random.split(key)
    x = jax.random.normal(kx, (N, input_channels, H, W), jnp.float32)
    params = init_params(kp, config['structure'], input_channels)

    fwd = jax.jit(projector_forward)
    out = jax.block_until_ready(fwd(x, params))

    ref = reference_forward(x, params)
    assert out.shape == (N, OUT_CHANNELS, H - 4, W - 4), out.shape
    err = float(jnp.max(jnp.abs(out - ref)))
    assert err < 1e-3, f"max abs err {err}"
    print("KERNEL_OK")
</pallas_src>

<mosaic_0001>
module attributes {stable_mosaic.version = 11 : i64} {
  func.func @_projector_kernel(%arg0: i32, %arg1: memref<224x36xf32, #tpu.memory_space<vmem>>, %arg2: memref<36x64xf32, #tpu.memory_space<vmem>>, %arg3: memref<1x64xf32, #tpu.memory_space<vmem>>, %arg4: memref<576x64xf32, #tpu.memory_space<vmem>>, %arg5: memref<1x64xf32, #tpu.memory_space<vmem>>, %arg6: memref<224x64xf32, #tpu.memory_space<vmem>>, %arg7: memref<264x64xf32, #tpu.memory_space<vmem>>) attributes {dimension_semantics = [#tpu.dimension_semantics<parallel>], iteration_bounds = array<i64: 2>, scalar_prefetch = 0 : i64, scratch_operands = 1 : i64, tpu.core_type = #tpu.core_type<tc>, window_params = [{transform_indices = @transform_0, window_bounds = array<i64: 224, 36>}, {pipeline_mode = #tpu.pipeline_mode<synchronous>, transform_indices = @transform_1, window_bounds = array<i64: 36, 64>}, {pipeline_mode = #tpu.pipeline_mode<synchronous>, transform_indices = @transform_2, window_bounds = array<i64: 1, 64>}, {pipeline_mode = #tpu.pipeline_mode<synchronous>, transform_indices = @transform_3, window_bounds = array<i64: 576, 64>}, {pipeline_mode = #tpu.pipeline_mode<synchronous>, transform_indices = @transform_4, window_bounds = array<i64: 1, 64>}, {transform_indices = @transform_5, window_bounds = array<i64: 224, 64>}]} {
    %c0 = arith.constant 0 : index
    %c0_0 = arith.constant 0 : index
    %0 = vector.load %arg1[%c0, %c0_0] : memref<224x36xf32, #tpu.memory_space<vmem>>, vector<224x36xf32>
    %c0_1 = arith.constant 0 : index
    %c0_2 = arith.constant 0 : index
    %1 = vector.load %arg2[%c0_1, %c0_2] : memref<36x64xf32, #tpu.memory_space<vmem>>, vector<36x64xf32>
    %cst = arith.constant dense<0.000000e+00> : vector<224x64xf32>
    %2 = tpu.matmul %0, %1, %cst {dimension_numbers = #tpu.dot_dimension_numbers<[1], [0], [0], [1], [0, 0, 1, 1], [], []>} : vector<224x36xf32>, vector<36x64xf32>, vector<224x64xf32> -> vector<224x64xf32>
    %c0_3 = arith.constant 0 : index
    %c0_4 = arith.constant 0 : index
    %3 = vector.load %arg3[%c0_3, %c0_4] : memref<1x64xf32, #tpu.memory_space<vmem>>, vector<1x64xf32>
    %4 = vector.broadcast %3 : vector<1x64xf32> to vector<224x64xf32>
    %5 = arith.addf %2, %4 : vector<224x64xf32>
    %cst_5 = arith.constant 0.000000e+00 : f32
    %6 = vector.broadcast %cst_5 : f32 to vector<224x64xf32>
    %7 = arith.maximumf %5, %6 : vector<224x64xf32>
    %c0_6 = arith.constant 0 : index
    %c0_7 = arith.constant 0 : index
    %8 = vector.load %arg7[%c0_6, %c0_7] : memref<264x64xf32, #tpu.memory_space<vmem>>, vector<224x64xf32>
    tpu.vector_store %arg7[%c0_6, %c0_7], %7 {strides = array<i32>} : memref<264x64xf32, #tpu.memory_space<vmem>>, vector<224x64xf32>,
    %cst_8 = arith.constant 0.000000e+00 : f32
    %9 = vector.broadcast %cst_8 : f32 to vector<40x64xf32>
    %c224 = arith.constant 224 : index
    %c0_9 = arith.constant 0 : index
    %10 = vector.load %arg7[%c224, %c0_9] : memref<264x64xf32, #tpu.memory_space<vmem>>, vector<40x64xf32>
    tpu.vector_store %arg7[%c224, %c0_9], %9 {strides = array<i32>} : memref<264x64xf32, #tpu.memory_space<vmem>>, vector<40x64xf32>,
    %c0_10 = arith.constant 0 : index
    %c0_11 = arith.constant 0 : index
    %11 = vector.load %arg7[%c0_10, %c0_11] : memref<264x64xf32, #tpu.memory_space<vmem>>, vector<224x64xf32>
    %c0_12 = arith.constant 0 : index
    %c0_13 = arith.constant 0 : index
    %12 = vector.load %arg4[%c0_12, %c0_13] : memref<576x64xf32, #tpu.memory_space<vmem>>, vector<64x64xf32>
    %cst_14 = arith.constant dense<0.000000e+00> : vector<224x64xf32>
    %13 = tpu.matmul %11, %12, %cst_14 {dimension_numbers = #tpu.dot_dimension_numbers<[1], [0], [0], [1], [0, 0, 1, 1], [], []>} : vector<224x64xf32>, vector<64x64xf32>, vector<224x64xf32> -> vector<224x64xf32>
    %c1 = arith.constant 1 : index
    %c0_15 = arith.constant 0 : index
    %14 = vector.load %arg7[%c1, %c0_15] : memref<264x64xf32, #tpu.memory_space<vmem>>, vector<224x64xf32>
    %c64 = arith.constant 64 : index
    %c0_16 = arith.constant 0 : index
    %15 = vector.load %arg4[%c64, %c0_16] : memref<576x64xf32, #tpu.memory_space<vmem>>, vector<64x64xf32>
    %cst_17 = arith.constant dense<0.000000e+00> : vector<224x64xf32>
    %16 = tpu.matmul %14, %15, %cst_17 {dimension_numbers = #tpu.dot_dimension_numbers<[1], [0], [0], [1], [0, 0, 1, 1], [], []>} : vector<224x64xf32>, vector<64x64xf32>, vector<224x64xf32> -> vector<224x64xf32>
    %17 = arith.addf %13, %16 : vector<224x64xf32>
    %c2 = arith.constant 2 : index
    %c0_18 = arith.constant 0 : index
    %18 = vector.load %arg7[%c2, %c0_18] : memref<264x64xf32, #tpu.memory_space<vmem>>, vector<224x64xf32>
    %c128 = arith.constant 128 : index
    %c0_19 = arith.constant 0 : index
    %19 = vector.load %arg4[%c128, %c0_19] : memref<576x64xf32, #tpu.memory_space<vmem>>, vector<64x64xf32>
    %cst_20 = arith.constant dense<0.000000e+00> : vector<224x64xf32>
    %20 = tpu.matmul %18, %19, %cst_20 {dimension_numbers = #tpu.dot_dimension_numbers<[1], [0], [0], [1], [0, 0, 1, 1], [], []>} : vector<224x64xf32>, vector<64x64xf32>, vector<224x64xf32> -> vector<224x64xf32>
    %21 = arith.addf %17, %20 : vector<224x64xf32>
    %c16 = arith.constant 16 : index
    %c0_21 = arith.constant 0 : index
    %22 = vector.load %arg7[%c16, %c0_21] : memref<264x64xf32, #tpu.memory_space<vmem>>, vector<224x64xf32>
    %c192 = arith.constant 192 : index
    %c0_22 = arith.constant 0 : index
    %23 = vector.load %arg4[%c192, %c0_22] : memref<576x64xf32, #tpu.memory_space<vmem>>, vector<64x64xf32>
    %cst_23 = arith.constant dense<0.000000e+00> : vector<224x64xf32>
    %24 = tpu.matmul %22, %23, %cst_23 {dimension_numbers = #tpu.dot_dimension_numbers<[1], [0], [0], [1], [0, 0, 1, 1], [], []>} : vector<224x64xf32>, vector<64x64xf32>, vector<224x64xf32> -> vector<224x64xf32>
    %25 = arith.addf %21, %24 : vector<224x64xf32>
    %c17 = arith.constant 17 : index
    %c0_24 = arith.constant 0 : index
    %26 = vector.load %arg7[%c17, %c0_24] : memref<264x64xf32, #tpu.memory_space<vmem>>, vector<224x64xf32>
    %c256 = arith.constant 256 : index
    %c0_25 = arith.constant 0 : index
    %27 = vector.load %arg4[%c256, %c0_25] : memref<576x64xf32, #tpu.memory_space<vmem>>, vector<64x64xf32>
    %cst_26 = arith.constant dense<0.000000e+00> : vector<224x64xf32>
    %28 = tpu.matmul %26, %27, %cst_26 {dimension_numbers = #tpu.dot_dimension_numbers<[1], [0], [0], [1], [0, 0, 1, 1], [], []>} : vector<224x64xf32>, vector<64x64xf32>, vector<224x64xf32> -> vector<224x64xf32>
    %29 = arith.addf %25, %28 : vector<224x64xf32>
    %c18 = arith.constant 18 : index
    %c0_27 = arith.constant 0 : index
    %30 = vector.load %arg7[%c18, %c0_27] : memref<264x64xf32, #tpu.memory_space<vmem>>, vector<224x64xf32>
    %c320 = arith.constant 320 : index
    %c0_28 = arith.constant 0 : index
    %31 = vector.load %arg4[%c320, %c0_28] : memref<576x64xf32, #tpu.memory_space<vmem>>, vector<64x64xf32>
    %cst_29 = arith.constant dense<0.000000e+00> : vector<224x64xf32>
    %32 = tpu.matmul %30, %31, %cst_29 {dimension_numbers = #tpu.dot_dimension_numbers<[1], [0], [0], [1], [0, 0, 1, 1], [], []>} : vector<224x64xf32>, vector<64x64xf32>, vector<224x64xf32> -> vector<224x64xf32>
    %33 = arith.addf %29, %32 : vector<224x64xf32>
    %c32 = arith.constant 32 : index
    %c0_30 = arith.constant 0 : index
    %34 = vector.load %arg7[%c32, %c0_30] : memref<264x64xf32, #tpu.memory_space<vmem>>, vector<224x64xf32>
    %c384 = arith.constant 384 : index
    %c0_31 = arith.constant 0 : index
    %35 = vector.load %arg4[%c384, %c0_31] : memref<576x64xf32, #tpu.memory_space<vmem>>, vector<64x64xf32>
    %cst_32 = arith.constant dense<0.000000e+00> : vector<224x64xf32>
    %36 = tpu.matmul %34, %35, %cst_32 {dimension_numbers = #tpu.dot_dimension_numbers<[1], [0], [0], [1], [0, 0, 1, 1], [], []>} : vector<224x64xf32>, vector<64x64xf32>, vector<224x64xf32> -> vector<224x64xf32>
    %37 = arith.addf %33, %36 : vector<224x64xf32>
    %c33 = arith.constant 33 : index
    %c0_33 = arith.constant 0 : index
    %38 = vector.load %arg7[%c33, %c0_33] : memref<264x64xf32, #tpu.memory_space<vmem>>, vector<224x64xf32>
    %c448 = arith.constant 448 : index
    %c0_34 = arith.constant 0 : index
    %39 = vector.load %arg4[%c448, %c0_34] : memref<576x64xf32, #tpu.memory_space<vmem>>, vector<64x64xf32>
    %cst_35 = arith.constant dense<0.000000e+00> : vector<224x64xf32>
    %40 = tpu.matmul %38, %39, %cst_35 {dimension_numbers = #tpu.dot_dimension_numbers<[1], [0], [0], [1], [0, 0, 1, 1], [], []>} : vector<224x64xf32>, vector<64x64xf32>, vector<224x64xf32> -> vector<224x64xf32>
    %41 = arith.addf %37, %40 : vector<224x64xf32>
    %c34 = arith.constant 34 : index
    %c0_36 = arith.constant 0 : index
    %42 = vector.load %arg7[%c34, %c0_36] : memref<264x64xf32, #tpu.memory_space<vmem>>, vector<224x64xf32>
    %c512 = arith.constant 512 : index
    %c0_37 = arith.constant 0 : index
    %43 = vector.load %arg4[%c512, %c0_37] : memref<576x64xf32, #tpu.memory_space<vmem>>, vector<64x64xf32>
    %cst_38 = arith.constant dense<0.000000e+00> : vector<224x64xf32>
    %44 = tpu.matmul %42, %43, %cst_38 {dimension_numbers = #tpu.dot_dimension_numbers<[1], [0], [0], [1], [0, 0, 1, 1], [], []>} : vector<224x64xf32>, vector<64x64xf32>, vector<224x64xf32> -> vector<224x64xf32>
    %45 = arith.addf %41, %44 : vector<224x64xf32>
    %c0_39 = arith.constant 0 : index
    %c0_40 = arith.constant 0 : index
    %46 = vector.load %arg5[%c0_39, %c0_40] : memref<1x64xf32, #tpu.memory_space<vmem>>, vector<1x64xf32>
    %47 = vector.broadcast %46 : vector<1x64xf32> to vector<224x64xf32>
    %48 = arith.addf %45, %47 : vector<224x64xf32>
    %cst_41 = arith.constant 0.000000e+00 : f32
    %49 = vector.broadcast %cst_41 : f32 to vector<224x64xf32>
    %50 = arith.maximumf %48, %49 : vector<224x64xf32>
    %cst_42 = arith.constant dense<0xFF800000> : vector<224xf32>
    %51 = vector.multi_reduction <maximumf>, %50, %cst_42 [1] : vector<224x64xf32> to vector<224xf32>
    %52 = vector.shape_cast %51 : vector<224xf32> to vector<224x1xf32>
    %53 = vector.broadcast %52 : vector<224x1xf32> to vector<224x64xf32>
    %54 = arith.subf %50, %53 : vector<224x64xf32>
    %55 = math.exp %54 : vector<224x64xf32>
    %cst_43 = arith.constant dense<0.000000e+00> : vector<224xf32>
    %56 = vector.multi_reduction <add>, %55, %cst_43 [1] : vector<224x64xf32> to vector<224xf32>
    %57 = vector.shape_cast %56 : vector<224xf32> to vector<224x1xf32>
    %58 = tpu.reciprocal %57 {approx = true} : vector<224x1xf32> -> vector<224x1xf32>
    %59 = vector.broadcast %58 : vector<224x1xf32> to vector<224x64xf32>
    %60 = arith.mulf %55, %59 : vector<224x64xf32>
    %c0_44 = arith.constant 0 : index
    %c0_45 = arith.constant 0 : index
    %61 = vector.load %arg6[%c0_44, %c0_45] : memref<224x64xf32, #tpu.memory_space<vmem>>, vector<224x64xf32>
    tpu.vector_store %arg6[%c0_44, %c0_45], %60 {strides = array<i32>} : memref<224x64xf32, #tpu.memory_space<vmem>>, vector<224x64xf32>,
    return
  }
  func.func @transform_0(%arg0: i32) -> (i32, i32) {
    %c0_i32 = arith.constant 0 : i32
    %c0_i32_0 = arith.constant 0 : i32
    return %arg0, %c0_i32 : i32, i32
  }
  func.func @transform_1(%arg0: i32) -> (i32, i32) {
    %c0_i32 = arith.constant 0 : i32
    %c0_i32_0 = arith.constant 0 : i32
    %c0_i32_1 = arith.constant 0 : i32
    return %c0_i32, %c0_i32_0 : i32, i32
  }
  func.func @transform_2(%arg0: i32) -> (i32, i32) {
    %c0_i32 = arith.constant 0 : i32
    %c0_i32_0 = arith.constant 0 : i32
    %c0_i32_1 = arith.constant 0 : i32
    return %c0_i32, %c0_i32_0 : i32, i32
  }
  func.func @transform_3(%arg0: i32) -> (i32, i32) {
    %c0_i32 = arith.constant 0 : i32
    %c0_i32_0 = arith.constant 0 : i32
    %c0_i32_1 = arith.constant 0 : i32
    return %c0_i32, %c0_i32_0 : i32, i32
  }
  func.func @transform_4(%arg0: i32) -> (i32, i32) {
    %c0_i32 = arith.constant 0 : i32
    %c0_i32_0 = arith.constant 0 : i32
    %c0_i32_1 = arith.constant 0 : i32
    return %c0_i32, %c0_i32_0 : i32, i32
  }
  func.func @transform_5(%arg0: i32) -> (i32, i32) {
    %c0_i32 = arith.constant 0 : i32
    %c0_i32_0 = arith.constant 0 : i32
    return %arg0, %c0_i32 : i32, i32
  }
}

</mosaic_0001>

<bundles_post_ra>
// kernel: projector_forward.1
= control target key start
LH: loop header
LB: loop body
LE: loop exit
PB: predicated region body
PF: predicated region fallthrough
CT: control target
= control target key end

     0   :  { %s5583_s18 = smov 0   ;;  %s7523_s0 = inlined_call_operand.vmem [shape: f32[448,36], index: 0, kind: input, shape index: {}]   ;;  %s7524_s1 = inlined_call_operand.vmem [shape: f32[36,64], index: 1, kind: input, shape index: {}]   ;;  %s7525_s2 = inlined_call_operand.vmem [shape: f32[1,64], index: 2, kind: input, shape index: {}]   ;;  %s7526_s3 = inlined_call_operand.vmem [shape: f32[576,64], index: 3, kind: input, shape index: {}]   ;;  %s7527_s4 = inlined_call_operand.vmem [shape: f32[1,64], index: 4, kind: input, shape index: {}]   ;;  %s7528_s5 = inlined_call_operand.vmem [shape: f32[448,64], index: 5, kind: output, shape index: {}]  }
   0x1 LB: > { %s4200_s19 = sadd.s32 4294967295, %s5550_s18   ;;  %p4204_p0 = scmp.ge.s32.totalorder %s5550_s18, 1  ;;  %s5550_s18 = sphi %s5583_s18, %s15_s18  }
   0x2   : > { %p188_p1 = scmp.lt.s32.totalorder %s5550_s18, 3 }
   0x4   : > { %p189_p2 = pnand %p4204_p0, %p188_p1 }
   0x6   : > { %192 = sbr.rel (%p189_p2) target bundleno = 1027 (0x403), region = 40 }
   0xb   : > { %v260_v0 = vld [vmem:[%s7524_s1 + $0x20] sm:$0xf]  ;;  %vm353_vm0 = vcmask 1043456   ;;  %v259_v1 = vld [vmem:[%s7524_s1 + $0x18] sm:$0xff]  ;;  %s216_s24 = smul.u32 28, %s4200_s19  ;;  %v258_v2 = vld [vmem:[%s7524_s1 + $0x10] sm:$0xff] }
   0xc   : > { %4849 = vmatprep.subr.msk.mxu0 %vm353_vm0, %v260_v0  ;;  %v257_v3 = vld [vmem:[%s7524_s1 + $0x8] sm:$0xff]  ;;  %v256_v4 = vld [vmem:[%s7524_s1] sm:$0xff]  ;;  %vm268_vm1 = vcmask 293888   ;;  %v659_v33 = vld [vmem:[%s7526_s3 + $0x38] sm:$0xff]  ;;  %vm590_vm2 = vcmask 523264   ;;  %v5552_v51 = vmov 0.0  }
   0xd   : > { %4850 = vmatpush3.msk.msra.mxu0 %vm353_vm0, %v260_v0  ;;  %p217_p3 = scmp.lt.s32.totalorder %s216_s24, 55  ;;  %v658_v34 = vld [vmem:[%s7526_s3 + $0x30] sm:$0xff]  ;;  %v695_v35 = vld [vmem:[%s7526_s3 + $0x78] sm:$0xff]  ;;  %v657_v36 = vld [vmem:[%s7526_s3 + $0x28] sm:$0xff]  ;;  %619 = vst.msk [vmem:[#allocation2 + $0xe0] sm:$0xff] %vm590_vm2, %v5552_v51 }
   0xe   : > { %4851 = vmatprep.subr.mxu0 %v259_v1  ;;  %4901 = vmatprep.subr.mxu1 %v695_v35  ;;  %v694_v37 = vld [vmem:[%s7526_s3 + $0x70] sm:$0xff]  ;;  %v656_v38 = vld [vmem:[%s7526_s3 + $0x20] sm:$0xff]  ;;  %v693_v39 = vld [vmem:[%s7526_s3 + $0x68] sm:$0xff]  ;;  %620 = vst.msk [vmem:[#allocation2 + $0xe8] sm:$0xff] %vm590_vm2, %v5552_v51 }
   0xf   : > { %4852 = vmatpush3.msra.mxu0 %v259_v1  ;;  %s7654_s24 = smov (!%p217_p3, %s216_s24), 55  ;;  %4902 = vmatpush3.msra.mxu1 %v695_v35  ;;  %v655_v40 = vld [vmem:[%s7526_s3 + $0x18] sm:$0xff]  ;;  %v692_v41 = vld [vmem:[%s7526_s3 + $0x60] sm:$0xff]  ;;  %v654_v42 = vld [vmem:[%s7526_s3 + $0x10] sm:$0xff]  ;;  %621 = vst.msk [vmem:[#allocation2 + $0xf0] sm:$0xff] %vm590_vm2, %v5552_v51 }
  0x10   : > { %4853 = vmatprep.subr.mxu0 %v258_v2  ;;  %s4205_s6 = sshll.u32 %s7654_s24, 3  ;;  %4903 = vmatprep.subr.mxu1 %v694_v37  ;;  %v691_v43 = vld [vmem:[%s7526_s3 + $0x58] sm:$0xff]  ;;  %v653_v44 = vld [vmem:[%s7526_s3 + $0x8] sm:$0xff]  ;;  %v690_v45 = vld [vmem:[%s7526_s3 + $0x50] sm:$0xff]  ;;  %622 = vst.msk [vmem:[#allocation2 + $0xf8] sm:$0xff] %vm590_vm2, %v5552_v51 }
  0x11   : > { %4854 = vmatpush3.msra.mxu0 %v258_v2  ;;  %s5614_s9 = scalar_lea.vmem %s7523_s0, %s4205_s6  ;;  %4904 = vmatpush3.msra.mxu1 %v694_v37  ;;  %v652_v46 = vld [vmem:[%s7526_s3] sm:$0xff]  ;;  %v689_v47 = vld [vmem:[%s7526_s3 + $0x48] sm:$0xff]  ;;  %v5723_v49 = vld [vmem:[%s7526_s3 + $0xb8] sm:$0xff]  ;;  %623 = vst.msk [vmem:[#allocation2 + $0x100] sm:$0xff] %vm590_vm2, %v5552_v51  ;;  %s7434_s30 = scalar_lea.vmem %s7528_s5, %s4205_s6 }
  0x12   : > { %4855 = vmatprep.subr.mxu0 %v257_v3  ;;  %v228_v5 = vld [vmem:[%s5614_s9] sm:$0xff]  ;;  %v229_v6 = vld [vmem:[%s5614_s9 + $0x8] sm:$0xff]  ;;  %v230_v7 = vld [vmem:[%s5614_s9 + $0x10] sm:$0xff]  ;;  %4905 = vmatprep.subr.mxu1 %v693_v39 }
  0x13   : > { %4856 = vmatpush3.msra.mxu0 %v257_v3  ;;  %4859 = vmatprep.mubr.msk.f32.mxu0 %vm268_vm1, %v228_v5  ;;  %v231_v8 = vld [vmem:[%s5614_s9 + $0x18] sm:$0xff]  ;;  %v232_v9 = vld [vmem:[%s5614_s9 + $0x20] sm:$0xff]  ;;  %v233_v10 = vld [vmem:[%s5614_s9 + $0x28] sm:$0xff] }
  0x14   : > { %4857 = vmatprep.subr.mxu0 %v256_v4  ;;  %v234_v11 = vld [vmem:[%s5614_s9 + $0x30] sm:$0xff]  ;;  %v235_v12 = vld [vmem:[%s5614_s9 + $0x38] sm:$0xff]  ;;  %v236_v13 = vld [vmem:[%s5614_s9 + $0x40] sm:$0xff]  ;;  %4906 = vmatpush3.msra.mxu1 %v693_v39 }
  0x15   : > { %4858 = vmatpush3.msra.mxu0 %v256_v4  ;;  %v237_v14 = vld [vmem:[%s5614_s9 + $0x48] sm:$0xff]  ;;  %v238_v15 = vld [vmem:[%s5614_s9 + $0x50] sm:$0xff]  ;;  %v239_v16 = vld [vmem:[%s5614_s9 + $0x58] sm:$0xff]  ;;  %4907 = vmatprep.subr.mxu1 %v692_v41 }
  0x16   : > { %4860 = vmatmul.mubr.msk.f32.vlgmr.msra.gmra.mxu0 %vm268_vm1, %v229_v6  ;;  %v240_v17 = vld [vmem:[%s5614_s9 + $0x60] sm:$0xff]  ;;  %v241_v18 = vld [vmem:[%s5614_s9 + $0x68] sm:$0xff]  ;;  %v242_v19 = vld [vmem:[%s5614_s9 + $0x70] sm:$0xff]  ;;  %4959 = vmatprep.subr.mxu0 %v659_v33 }
  0x17   : > { %4862 = vmatprep.mubr.msk.f32.mxu0 %vm268_vm1, %v230_v7  ;;  %v243_v20 = vld [vmem:[%s5614_s9 + $0x78] sm:$0xff]  ;;  %v244_v21 = vld [vmem:[%s5614_s9 + $0x80] sm:$0xff]  ;;  %v245_v22 = vld [vmem:[%s5614_s9 + $0x88] sm:$0xff]  ;;  %4960 = vmatpush3.msra.mxu0 %v659_v33 }
  0x18   : > { %v246_v23 = vld [vmem:[%s5614_s9 + $0x90] sm:$0xff]  ;;  %v247_v24 = vld [vmem:[%s5614_s9 + $0x98] sm:$0xff]  ;;  %v248_v25 = vld [vmem:[%s5614_s9 + $0xa0] sm:$0xff]  ;;  %4961 = vmatprep.subr.mxu0 %v658_v34  ;;  %4908 = vmatpush3.msra.mxu1 %v692_v41 }
  0x19   : > { %v249_v26 = vld [vmem:[%s5614_s9 + $0xa8] sm:$0xff]  ;;  %v250_v27 = vld [vmem:[%s5614_s9 + $0xb0] sm:$0xff]  ;;  %v251_v28 = vld [vmem:[%s5614_s9 + $0xb8] sm:$0xff]  ;;  %4962 = vmatpush3.msra.mxu0 %v658_v34  ;;  %4909 = vmatprep.subr.mxu1 %v691_v43 }
  0x1a   : > { %4863 = vmatmul.mubr.msk.f32.gmra.mxu0 %vm268_vm1, %v231_v8  ;;  %v252_v29 = vld [vmem:[%s5614_s9 + $0xc0] sm:$0xff]  ;;  %v253_v30 = vld [vmem:[%s5614_s9 + $0xc8] sm:$0xff]  ;;  %v254_v31 = vld [vmem:[%s5614_s9 + $0xd0] sm:$0xff]  ;;  %4963 = vmatprep.subr.mxu0 %v657_v36 }
  0x1b   : > { %4865 = vmatprep.mubr.msk.f32.mxu0 %vm268_vm1, %v232_v9  ;;  %v255_v32 = vld [vmem:[%s5614_s9 + $0xd8] sm:$0xff]  ;;  %4964 = vmatpush3.msra.mxu0 %v657_v36  ;;  %v688_v48 = vld [vmem:[%s7526_s3 + $0x40] sm:$0xff] }
  0x1c   : > { %4965 = vmatprep.subr.mxu0 %v656_v38  ;;  %4910 = vmatpush3.msra.mxu1 %v691_v43  ;;  %v1662_v50 = vld [vmem:[%s7526_s3 + $0xf8] sm:$0xff]  ;;  %v5737_v52 = vld [vmem:[%s7525_s2] ss:$0 sm:$0xff] }
  0x1d   : > { %4966 = vmatpush3.msra.mxu0 %v656_v38  ;;  %4911 = vmatprep.subr.mxu1 %v690_v45  ;;  %v1306_v37 = vld [vmem:[%s7526_s3 + $0xa0] sm:$0xff]  ;;  %v1660_v38 = vld [vmem:[%s7526_s3 + $0xe8] sm:$0xff]  ;;  %v1305_v43 = vld [vmem:[%s7526_s3 + $0x98] sm:$0xff] }
  0x1e   : > { %4866 = vmatmul.mubr.msk.f32.gmra.mxu0 %vm268_vm1, %v233_v10  ;;  %4967 = vmatprep.subr.mxu0 %v655_v40 }
  0x1f   : > { %4868 = vmatprep.mubr.msk.f32.mxu0 %vm268_vm1, %v234_v11  ;;  %4968 = vmatpush3.msra.mxu0 %v655_v40 }
  0x20   : > { %4969 = vmatprep.subr.mxu0 %v654_v42  ;;  %4912 = vmatpush3.msra.mxu1 %v690_v45 }
  0x21   : > { %4970 = vmatpush3.msra.mxu0 %v654_v42  ;;  %4913 = vmatprep.subr.mxu1 %v689_v47 }
  0x22   : > { %4869 = vmatmul.mubr.msk.f32.gmra.mxu0 %vm268_vm1, %v235_v12  ;;  %4971 = vmatprep.subr.mxu0 %v653_v44 }
  0x23   : > { %4871 = vmatprep.mubr.msk.f32.mxu0 %vm268_vm1, %v236_v13  ;;  %4972 = vmatpush3.msra.mxu0 %v653_v44 }
  0x24   : > { %4973 = vmatprep.subr.mxu0 %v652_v46  ;;  %4914 = vmatpush3.msra.mxu1 %v689_v47 }
  0x25   : > { %4974 = vmatpush3.msra.mxu0 %v652_v46  ;;  %4915 = vmatprep.subr.mxu1 %v688_v48 }
  0x26   : > { %4872 = vmatmul.mubr.msk.f32.gmra.mxu0 %vm268_vm1, %v237_v14  ;;  %4916 = vmatpush3.msra.mxu1 %v688_v48 }
  0x27   : > { %4874 = vmatprep.mubr.msk.f32.mxu0 %vm268_vm1, %v238_v15  ;;  %5017 = vmatprep.subr.mxu1 %v5723_v49  ;;  %v1661_v15 = vld [vmem:[%s7526_s3 + $0xf0] sm:$0xff] }
  0x28   : > { %5075 = vmatprep.subr.mxu0 %v1662_v50 }
  0x2a   : > { %4875 = vmatmul.mubr.msk.f32.gmra.mxu0 %vm268_vm1, %v239_v16 }
  0x2b   : > { %4877 = vmatprep.mubr.msk.f32.mxu0 %vm268_vm1, %v240_v17 }
  0x2e   : > { %4878 = vmatmul.mubr.msk.f32.gmra.mxu0 %vm268_vm1, %v241_v18 }
  0x2f   : > { %4880 = vmatprep.mubr.msk.f32.mxu0 %vm268_vm1, %v242_v19  ;;  %v1308_v19 = vld [vmem:[%s7526_s3 + $0xb0] sm:$0xff] }
  0x32   : > { %4881 = vmatmul.mubr.msk.f32.gmra.mxu0 %vm268_vm1, %v243_v20 }
  0x33   : > { %4883 = vmatprep.mubr.msk.f32.mxu0 %vm268_vm1, %v244_v21 }
  0x36   : > { %4884 = vmatmul.mubr.msk.f32.gmra.mxu0 %vm268_vm1, %v245_v22 }
  0x37   : > { %4886 = vmatprep.mubr.msk.f32.mxu0 %vm268_vm1, %v246_v23 }
  0x3a   : > { %4887 = vmatmul.mubr.msk.f32.gmra.mxu0 %vm268_vm1, %v247_v24 }
  0x3b   : > { %4889 = vmatprep.mubr.msk.f32.mxu0 %vm268_vm1, %v248_v25 }
  0x3e   : > { %4890 = vmatmul.mubr.msk.f32.gmra.mxu0 %vm268_vm1, %v249_v26 }
  0x3f   : > { %4892 = vmatprep.mubr.msk.f32.mxu0 %vm268_vm1, %v250_v27 }
  0x42   : > { %4893 = vmatmul.mubr.msk.f32.gmra.mxu0 %vm268_vm1, %v251_v28 }
  0x43   : > { %4895 = vmatprep.mubr.msk.f32.mxu0 %vm268_vm1, %v252_v29 }
  0x46   : > { %4896 = vmatmul.mubr.msk.f32.gmra.mxu0 %vm268_vm1, %v253_v30  ;;  %v1307_v30 = vld [vmem:[%s7526_s3 + $0xa8] sm:$0xff] }
  0x47   : > { %4898 = vmatprep.mubr.msk.f32.mxu0 %vm268_vm1, %v254_v31 }
  0x4a   : > { %4899 = vmatmul.mubr.msk.f32.gmra.mxu0 %vm268_vm1, %v255_v32 }
  0xd6   : > { %v4861_v53 = vpop.f32.mrf.mxu0 }
  0xd7   : > { %v429_v54 = vadd.f32 %v4861_v53, %v5737_v52 }
  0xd8   : > { %v423_v55 = vpop.f32.mrf.mxu0 }
  0xd9   : > { %v563_v56 = vmax.f32 %v429_v54, 0.0  ;;  %v424_v57 = vadd.f32 %v5737_v52, %v423_v55  ;;  %v1304_v55 = vld [vmem:[%s7526_s3 + $0x90] sm:$0xff] }
  0xda   : > { %v4864_v58 = vpop.f32.mrf.mxu0 }
  0xdb   : > { %592 = vst.msk [vmem:[#allocation2 + $0x8] sm:$0xff] %vm590_vm2, %v563_v56  ;;  %v562_v59 = vmax.f32 %v424_v57, 0.0  ;;  %v439_v60 = vadd.f32 %v4864_v58, %v5737_v52 }
  0xdc   : > { %v433_v61 = vpop.f32.mrf.mxu0 }
  0xdd   : > { %591 = vst.msk [vmem:[#allocation2] sm:$0xff] %vm590_vm2, %v562_v59  ;;  %v565_v62 = vmax.f32 %v439_v60, 0.0  ;;  %v434_v63 = vadd.f32 %v5737_v52, %v433_v61 }
  0xde   : > { %v4867_v0 = vpop.f32.mrf.mxu0 }
  0xdf   : > { %594 = vst.msk [vmem:[#allocation2 + $0x18] sm:$0xff] %vm590_vm2, %v565_v62  ;;  %v564_v1 = vmax.f32 %v434_v63, 0.0  ;;  %v449_v2 = vadd.f32 %v4867_v0, %v5737_v52  ;;  %v1303_v62 = vld [vmem:[%s7526_s3 + $0x88] sm:$0xff]  ;;  %v1659_v63 = vld [vmem:[%s7526_s3 + $0xe0] sm:$0xff] }
  0xe0   : > { %v443_v3 = vpop.f32.mrf.mxu0 }
  0xe1   : > { %593 = vst.msk [vmem:[#allocation2 + $0x10] sm:$0xff] %vm590_vm2, %v564_v1  ;;  %v567_v4 = vmax.f32 %v449_v2, 0.0  ;;  %v444_v5 = vadd.f32 %v5737_v52, %v443_v3 }
  0xe2   : > { %v4870_v6 = vpop.f32.mrf.mxu0  ;;  %v625_v14 = vld [vmem:[#allocation2 + $0x8] sm:$0xff] }
  0xe3   : > { %596 = vst.msk [vmem:[#allocation2 + $0x28] sm:$0xff] %vm590_vm2, %v567_v4  ;;  %v566_v7 = vmax.f32 %v444_v5, 0.0  ;;  %v459_v8 = vadd.f32 %v4870_v6, %v5737_v52  ;;  %v1302_v4 = vld [vmem:[%s7526_s3 + $0x80] sm:$0xff] }
  0xe4   : > { %v453_v9 = vpop.f32.mrf.mxu0  ;;  %v660_v10 = vld [vmem:[#allocation2 + $0x1] sm:$0xff] }
  0xe5   : > { %v624_v11 = vld [vmem:[#allocation2] sm:$0xff]  ;;  %595 = vst.msk [vmem:[#allocation2 + $0x20] sm:$0xff] %vm590_vm2, %v566_v7  ;;  %v569_v12 = vmax.f32 %v459_v8, 0.0  ;;  %v454_v13 = vadd.f32 %v5737_v52, %v453_v9  ;;  %4917 = vmatprep.mubr.msk.f32.mxu1 %vm590_vm2, %v660_v10 }
  0xe6   : > { %4975 = vmatprep.mubr.msk.f32.mxu0 %vm590_vm2, %v624_v11  ;;  %v4873_v16 = vpop.f32.mrf.mxu0  ;;  %v5776_v27 = vld [vmem:[#allocation2 + $0x18] sm:$0xff] }
  0xe7   : > { %4976 = vmatmul.mubr.msk.f32.vlgmr.msra.gmra.mxu0 %vm590_vm2, %v625_v14  ;;  %598 = vst.msk [vmem:[#allocation2 + $0x38] sm:$0xff] %vm590_vm2, %v569_v12  ;;  %v568_v17 = vmax.f32 %v454_v13, 0.0  ;;  %v469_v18 = vadd.f32 %v4873_v16, %v5737_v52  ;;  %v5892_v16 = vld [vmem:[%s7526_s3 + $0x138] sm:$0xff] }
  0xe8   : > { %5076 = vmatpush3.msra.mxu0 %v1662_v50  ;;  %v463_v20 = vpop.f32.mrf.mxu0  ;;  %v661_v21 = vld [vmem:[#allocation2 + $0x9] sm:$0xff]  ;;  %v5766_v23 = vld [vmem:[#allocation2 + $0x11] sm:$0xff] }
  0xe9   : > { %v5764_v22 = vld [vmem:[#allocation2 + $0x10] sm:$0xff]  ;;  %5077 = vmatprep.subr.mxu0 %v1661_v15  ;;  %597 = vst.msk [vmem:[#allocation2 + $0x30] sm:$0xff] %vm590_vm2, %v568_v17  ;;  %v571_v24 = vmax.f32 %v469_v18, 0.0  ;;  %v464_v25 = vadd.f32 %v5737_v52, %v463_v20  ;;  %4918 = vmatmul.mubr.msk.f32.vlgmr.msra.gmra.mxu1 %vm590_vm2, %v661_v21 }
  0xea   : > { %4978 = vmatprep.mubr.msk.f32.mxu0 %vm590_vm2, %v5764_v22  ;;  %5018 = vmatpush3.msra.mxu1 %v5723_v49  ;;  %v4876_v26 = vpop.f32.mrf.mxu0  ;;  %v5805_v40 = vld [vmem:[#allocation2 + $0x28] sm:$0xff] }
  0xeb   : > { %4920 = vmatprep.mubr.msk.f32.mxu1 %vm590_vm2, %v5766_v23  ;;  %600 = vst.msk [vmem:[#allocation2 + $0x48] sm:$0xff] %vm590_vm2, %v571_v24  ;;  %v570_v28 = vmax.f32 %v464_v25, 0.0  ;;  %v479_v29 = vadd.f32 %v4876_v26, %v5737_v52  ;;  %4979 = vmatmul.mubr.msk.f32.gmra.mxu0 %vm590_vm2, %v5776_v27 }
  0xec   : > { %5019 = vmatprep.subr.mxu1 %v1308_v19  ;;  %v473_v31 = vpop.f32.mrf.mxu0  ;;  %v5785_v32 = vld [vmem:[#allocation2 + $0x19] sm:$0xff]  ;;  %v5789_v34 = vld [vmem:[#allocation2 + $0x21] sm:$0xff]  ;;  %5078 = vmatpush3.msra.mxu0 %v1661_v15 }
  0xed   : > { %v5787_v33 = vld [vmem:[#allocation2 + $0x20] sm:$0xff]  ;;  %5020 = vmatpush3.msra.mxu1 %v1308_v19  ;;  %599 = vst.msk [vmem:[#allocation2 + $0x40] sm:$0xff] %vm590_vm2, %v570_v28  ;;  %v573_v35 = vmax.f32 %v479_v29, 0.0  ;;  %v474_v36 = vadd.f32 %v5737_v52, %v473_v31  ;;  %5079 = vmatprep.subr.mxu0 %v1660_v38  ;;  %v1658_v15 = vld [vmem:[%s7526_s3 + $0xd8] sm:$0xff] }
  0xee   : > { %4921 = vmatmul.mubr.msk.f32.gmra.mxu1 %vm590_vm2, %v5785_v32  ;;  %4981 = vmatprep.mubr.msk.f32.mxu0 %vm590_vm2, %v5787_v33  ;;  %v4879_v39 = vpop.f32.mrf.mxu0  ;;  %v5828_v51 = vld [vmem:[#allocation2 + $0x38] sm:$0xff] }
  0xef   : > { %4923 = vmatprep.mubr.msk.f32.mxu1 %vm590_vm2, %v5789_v34  ;;  %5021 = vmatprep.subr.mxu1 %v1307_v30  ;;  %602 = vst.msk [vmem:[#allocation2 + $0x58] sm:$0xff] %vm590_vm2, %v573_v35  ;;  %v572_v41 = vmax.f32 %v474_v36, 0.0  ;;  %v489_v42 = vadd.f32 %v4879_v39, %v5737_v52 }
  0xf0   : > { %4982 = vmatmul.mubr.msk.f32.gmra.mxu0 %vm590_vm2, %v5805_v40  ;;  %5022 = vmatpush3.msra.mxu1 %v1307_v30  ;;  %v483_v44 = vpop.f32.mrf.mxu0  ;;  %v5814_v45 = vld [vmem:[#allocation2 + $0x29] sm:$0xff]  ;;  %v5818_v47 = vld [vmem:[#allocation2 + $0x31] sm:$0xff] }
  0xf1   : > { %v5816_v46 = vld [vmem:[#allocation2 + $0x30] sm:$0xff]  ;;  %5023 = vmatprep.subr.mxu1 %v1306_v37  ;;  %601 = vst.msk [vmem:[#allocation2 + $0x50] sm:$0xff] %vm590_vm2, %v572_v41  ;;  %v575_v48 = vmax.f32 %v489_v42, 0.0  ;;  %v484_v49 = vadd.f32 %v5737_v52, %v483_v44  ;;  %5080 = vmatpush3.msra.mxu0 %v1660_v38 }
  0xf2   : > { %4924 = vmatmul.mubr.msk.f32.gmra.mxu1 %vm590_vm2, %v5814_v45  ;;  %4984 = vmatprep.mubr.msk.f32.mxu0 %vm590_vm2, %v5816_v46  ;;  %v4882_v50 = vpop.f32.mrf.mxu0  ;;  %v5857_v1 = vld [vmem:[#allocation2 + $0x48] sm:$0xff]  ;;  %v1657_v30 = vld [vmem:[%s7526_s3 + $0xd0] sm:$0xff] }
  0xf3   : > { %4926 = vmatprep.mubr.msk.f32.mxu1 %vm590_vm2, %v5818_v47  ;;  %5024 = vmatpush3.msra.mxu1 %v1306_v37  ;;  %604 = vst.msk [vmem:[#allocation2 + $0x68] sm:$0xff] %vm590_vm2, %v575_v48  ;;  %v574_v53 = vmax.f32 %v484_v49, 0.0  ;;  %v499_v54 = vadd.f32 %v4882_v50, %v5737_v52  ;;  %v1656_v48 = vld [vmem:[%s7526_s3 + $0xc8] sm:$0xff] }
  0xf4   : > { %4985 = vmatmul.mubr.msk.f32.gmra.mxu0 %vm590_vm2, %v5828_v51  ;;  %5025 = vmatprep.subr.mxu1 %v1305_v43  ;;  %v493_v56 = vpop.f32.mrf.mxu0  ;;  %v5837_v57 = vld [vmem:[#allocation2 + $0x39] sm:$0xff]  ;;  %v5841_v59 = vld [vmem:[#allocation2 + $0x41] sm:$0xff] }
  0xf5   : > { %v5839_v58 = vld [vmem:[#allocation2 + $0x40] sm:$0xff]  ;;  %5026 = vmatpush3.msra.mxu1 %v1305_v43  ;;  %603 = vst.msk [vmem:[#allocation2 + $0x60] sm:$0xff] %vm590_vm2, %v574_v53  ;;  %v577_v60 = vmax.f32 %v499_v54, 0.0  ;;  %v494_v61 = vadd.f32 %v5737_v52, %v493_v56  ;;  %5081 = vmatprep.subr.mxu0 %v1659_v63 }
  0xf6   : > { %4927 = vmatmul.mubr.msk.f32.gmra.mxu1 %vm590_vm2, %v5837_v57  ;;  %4987 = vmatprep.mubr.msk.f32.mxu0 %vm590_vm2, %v5839_v58  ;;  %v4885_v0 = vpop.f32.mrf.mxu0  ;;  %v5880_v12 = vld [vmem:[#allocation2 + $0x58] sm:$0xff] }
  0xf7   : > { %4929 = vmatprep.mubr.msk.f32.mxu1 %vm590_vm2, %v5841_v59  ;;  %5027 = vmatprep.subr.mxu1 %v1304_v55  ;;  %606 = vst.msk [vmem:[#allocation2 + $0x78] sm:$0xff] %vm590_vm2, %v577_v60  ;;  %v576_v2 = vmax.f32 %v494_v61, 0.0  ;;  %v509_v3 = vadd.f32 %v4885_v0, %v5737_v52  ;;  %v1655_v0 = vld [vmem:[%s7526_s3 + $0xc0] sm:$0xff] }
  0xf8   : > { %4988 = vmatmul.mubr.msk.f32.gmra.mxu0 %vm590_vm2, %v5857_v1  ;;  %5028 = vmatpush3.msra.mxu1 %v1304_v55  ;;  %v503_v5 = vpop.f32.mrf.mxu0  ;;  %v5866_v6 = vld [vmem:[#allocation2 + $0x49] sm:$0xff]  ;;  %v5870_v8 = vld [vmem:[#allocation2 + $0x51] sm:$0xff] }
  0xf9   : > { %v5868_v7 = vld [vmem:[#allocation2 + $0x50] sm:$0xff]  ;;  %5029 = vmatprep.subr.mxu1 %v1303_v62  ;;  %605 = vst.msk [vmem:[#allocation2 + $0x70] sm:$0xff] %vm590_vm2, %v576_v2  ;;  %v579_v9 = vmax.f32 %v509_v3, 0.0  ;;  %v504_v10 = vadd.f32 %v5737_v52, %v503_v5  ;;  %5082 = vmatpush3.msra.mxu0 %v1659_v63 }
  0xfa   : > { %4930 = vmatmul.mubr.msk.f32.gmra.mxu1 %vm590_vm2, %v5866_v6  ;;  %4990 = vmatprep.mubr.msk.f32.mxu0 %vm590_vm2, %v5868_v7  ;;  %v4888_v11 = vpop.f32.mrf.mxu0  ;;  %v5908_v26 = vld [vmem:[#allocation2 + $0x68] sm:$0xff] }
  0xfb   : > { %4932 = vmatprep.mubr.msk.f32.mxu1 %vm590_vm2, %v5870_v8  ;;  %5030 = vmatpush3.msra.mxu1 %v1303_v62  ;;  %608 = vst.msk [vmem:[#allocation2 + $0x88] sm:$0xff] %vm590_vm2, %v579_v9  ;;  %v578_v13 = vmax.f32 %v504_v10, 0.0  ;;  %v519_v14 = vadd.f32 %v4888_v11, %v5737_v52 }
  0xfc   : > { %4991 = vmatmul.mubr.msk.f32.gmra.mxu0 %vm590_vm2, %v5880_v12  ;;  %5031 = vmatprep.subr.mxu1 %v1302_v4  ;;  %v513_v17 = vpop.f32.mrf.mxu0  ;;  %v5894_v18 = vld [vmem:[#allocation2 + $0x59] sm:$0xff]  ;;  %v5898_v20 = vld [vmem:[#allocation2 + $0x61] sm:$0xff] }
  0xfd   : > { %v5896_v19 = vld [vmem:[#allocation2 + $0x60] sm:$0xff]  ;;  %5032 = vmatpush3.msra.mxu1 %v1302_v4  ;;  %607 = vst.msk [vmem:[#allocation2 + $0x80] sm:$0xff] %vm590_vm2, %v578_v13  ;;  %v581_v21 = vmax.f32 %v519_v14, 0.0  ;;  %v514_v24 = vadd.f32 %v5737_v52, %v513_v17  ;;  %5083 = vmatprep.subr.mxu0 %v1658_v15  ;;  %v2368_v17 = vld [vmem:[%s7526_s3 + $0x178] sm:$0xff] }
  0xfe   : > { %4933 = vmatmul.mubr.msk.f32.gmra.mxu1 %vm590_vm2, %v5894_v18  ;;  %4993 = vmatprep.mubr.msk.f32.mxu0 %vm590_vm2, %v5896_v19  ;;  %v4891_v25 = vpop.f32.mrf.mxu0  ;;  %v5932_v42 = vld [vmem:[#allocation2 + $0x78] sm:$0xff] }
  0xff   : > { %4935 = vmatprep.mubr.msk.f32.mxu1 %vm590_vm2, %v5898_v20  ;;  %610 = vst.msk [vmem:[#allocation2 + $0x98] sm:$0xff] %vm590_vm2, %v581_v21  ;;  %v580_v28 = vmax.f32 %v514_v24, 0.0  ;;  %v529_v29 = vadd.f32 %v4891_v25, %v5737_v52  ;;  %5133 = vmatprep.subr.mxu1 %v5892_v16 }
 0x100   : > { %4994 = vmatmul.mubr.msk.f32.gmra.mxu0 %vm590_vm2, %v5908_v26  ;;  %v523_v31 = vpop.f32.mrf.mxu0  ;;  %v5918_v35 = vld [vmem:[#allocation2 + $0x69] sm:$0xff]  ;;  %v5922_v37 = vld [vmem:[#allocation2 + $0x71] sm:$0xff] }
 0x101   : > { %v5920_v36 = vld [vmem:[#allocation2 + $0x70] sm:$0xff]  ;;  %5084 = vmatpush3.msra.mxu0 %v1658_v15  ;;  %609 = vst.msk [vmem:[#allocation2 + $0x90] sm:$0xff] %vm590_vm2, %v580_v28  ;;  %v583_v38 = vmax.f32 %v529_v29, 0.0  ;;  %v524_v39 = vadd.f32 %v5737_v52, %v523_v31 }
 0x102   : > { %4936 = vmatmul.mubr.msk.f32.gmra.mxu1 %vm590_vm2, %v5918_v35  ;;  %4996 = vmatprep.mubr.msk.f32.mxu0 %vm590_vm2, %v5920_v36  ;;  %v4894_v41 = vpop.f32.mrf.mxu0  ;;  %v5955_v61 = vld [vmem:[#allocation2 + $0x88] sm:$0xff] }
 0x103   : > { %4938 = vmatprep.mubr.msk.f32.mxu1 %vm590_vm2, %v5922_v37  ;;  %5085 = vmatprep.subr.mxu0 %v1657_v30  ;;  %612 = vst.msk [vmem:[#allocation2 + $0xa8] sm:$0xff] %vm590_vm2, %v583_v38  ;;  %v582_v43 = vmax.f32 %v524_v39, 0.0  ;;  %v539_v44 = vadd.f32 %v4894_v41, %v5737_v52 }
 0x104   : > { %4997 = vmatmul.mubr.msk.f32.gmra.mxu0 %vm590_vm2, %v5932_v42  ;;  %v533_v49 = vpop.f32.mrf.mxu0  ;;  %v5941_v50 = vld [vmem:[#allocation2 + $0x79] sm:$0xff]  ;;  %v5945_v54 = vld [vmem:[#allocation2 + $0x81] sm:$0xff] }
 0x105   : > { %v5943_v53 = vld [vmem:[#allocation2 + $0x80] sm:$0xff]  ;;  %5086 = vmatpush3.msra.mxu0 %v1657_v30  ;;  %611 = vst.msk [vmem:[#allocation2 + $0xa0] sm:$0xff] %vm590_vm2, %v582_v43  ;;  %v585_v55 = vmax.f32 %v539_v44, 0.0  ;;  %v534_v56 = vadd.f32 %v5737_v52, %v533_v49 }
 0x106   : > { %4939 = vmatmul.mubr.msk.f32.gmra.mxu1 %vm590_vm2, %v5941_v50  ;;  %4999 = vmatprep.mubr.msk.f32.mxu0 %vm590_vm2, %v5943_v53  ;;  %v4897_v60 = vpop.f32.mrf.mxu0  ;;  %v5978_v13 = vld [vmem:[#allocation2 + $0x98] sm:$0xff] }
 0x107   : > { %4941 = vmatprep.mubr.msk.f32.mxu1 %vm590_vm2, %v5945_v54  ;;  %5087 = vmatprep.subr.mxu0 %v1656_v48  ;;  %614 = vst.msk [vmem:[#allocation2 + $0xb8] sm:$0xff] %vm590_vm2, %v585_v55  ;;  %v584_v62 = vmax.f32 %v534_v56, 0.0  ;;  %v549_v63 = vadd.f32 %v4897_v60, %v5737_v52  ;;  %7545 = vst [vmem:[#allocation4_spill] sm:$0xff] %v5978_v13 }
 0x108   : > { %5000 = vmatmul.mubr.msk.f32.gmra.mxu0 %vm590_vm2, %v5955_v61  ;;  %v543_v2 = vpop.f32.mrf.mxu0  ;;  %v5964_v3 = vld [vmem:[#allocation2 + $0x89] sm:$0xff]  ;;  %v5968_v5 = vld [vmem:[#allocation2 + $0x91] sm:$0xff] }
 0x109   : > { %v5966_v4 = vld [vmem:[#allocation2 + $0x90] sm:$0xff]  ;;  %5088 = vmatpush3.msra.mxu0 %v1656_v48  ;;  %613 = vst.msk [vmem:[#allocation2 + $0xb0] sm:$0xff] %vm590_vm2, %v584_v62  ;;  %v587_v9 = vmax.f32 %v549_v63, 0.0  ;;  %v544_v10 = vadd.f32 %v5737_v52, %v543_v2  ;;  %v1274_v2 = vld [vmem:[#allocation2 + $0x2] sm:$0xff] }
 0x10a   : > { %7544 = vst [vmem:[#allocation3_spill] sm:$0xff] %v5966_v4  ;;  %4942 = vmatmul.mubr.msk.f32.gmra.mxu1 %vm590_vm2, %v5964_v3  ;;  %5002 = vmatprep.mubr.msk.f32.mxu0 %vm590_vm2, %v5966_v4  ;;  %v4900_v11 = vpop.f32.mrf.mxu0  ;;  %v6001_v31 = vld [vmem:[#allocation2 + $0xa8] sm:$0xff] }
 0x10b   : > { %4944 = vmatprep.mubr.msk.f32.mxu1 %vm590_vm2, %v5968_v5  ;;  %5089 = vmatprep.subr.mxu0 %v1655_v0  ;;  %616 = vst.msk [vmem:[#allocation2 + $0xc8] sm:$0xff] %vm590_vm2, %v587_v9  ;;  %v586_v14 = vmax.f32 %v544_v10, 0.0  ;;  %v559_v15 = vadd.f32 %v4900_v11, %v5737_v52  ;;  %7547 = vst [vmem:[#allocation6_spill] sm:$0xff] %v6001_v31  ;;  %v2367_v9 = vld [vmem:[%s7526_s3 + $0x170] sm:$0xff] }
 0x10c   : > { %5003 = vmatmul.mubr.msk.f32.gmra.mxu0 %vm590_vm2, %v5978_v13  ;;  %v553_v21 = vpop.f32.mrf.mxu0  ;;  %v5987_v24 = vld [vmem:[#allocation2 + $0x99] sm:$0xff]  ;;  %v5991_v28 = vld [vmem:[#allocation2 + $0xa1] sm:$0xff]  ;;  %v1275_v10 = vld [vmem:[#allocation2 + $0xa] sm:$0xff] }
 0x10d   : > { %v5989_v25 = vld [vmem:[#allocation2 + $0xa0] sm:$0xff]  ;;  %5090 = vmatpush3.msra.mxu0 %v1655_v0  ;;  %615 = vst.msk [vmem:[#allocation2 + $0xc0] sm:$0xff] %vm590_vm2, %v586_v14  ;;  %v589_v29 = vmax.f32 %v559_v15, 0.0  ;;  %v554_v30 = vadd.f32 %v5737_v52, %v553_v21  ;;  %v6073_v11 = vld [vmem:[#allocation2 + $0x12] sm:$0xff]  ;;  %v2366_v21 = vld [vmem:[%s7526_s3 + $0x168] sm:$0xff] }
 0x10e   : > { %7546 = vst [vmem:[#allocation5_spill] sm:$0xff] %v5989_v25  ;;  %4945 = vmatmul.mubr.msk.f32.gmra.mxu1 %vm590_vm2, %v5987_v24  ;;  %5005 = vmatprep.mubr.msk.f32.mxu0 %vm590_vm2, %v5989_v25  ;;  %v6019_v43 = vld [vmem:[#allocation2 + $0xb8] sm:$0xff]  ;;  %v6092_v14 = vld [vmem:[#allocation2 + $0x22] sm:$0xff]  ;;  %v2010_v15 = vld [vmem:[%s7526_s3 + $0x110] sm:$0xff] }
 0x10f   : > { %4947 = vmatprep.mubr.msk.f32.mxu1 %vm590_vm2, %v5991_v28  ;;  %5191 = vmatprep.subr.mxu0 %v2368_v17  ;;  %618 = vst.msk [vmem:[#allocation2 + $0xd8] sm:$0xff] %vm590_vm2, %v589_v29  ;;  %v588_v38 = vmax.f32 %v554_v30, 0.0  ;;  %7549 = vst [vmem:[#allocation8_spill] sm:$0xff] %v6019_v43  ;;  %v6128_v29 = vld [vmem:[#allocation2 + $0x42] sm:$0xff]  ;;  %v6139_v30 = vld [vmem:[#allocation2 + $0x4a] sm:$0xff] }
 0x110   : > { %5006 = vmatmul.mubr.msk.f32.gmra.mxu0 %vm590_vm2, %v6001_v31  ;;  %v6006_v39 = vld [vmem:[#allocation2 + $0xa9] sm:$0xff]  ;;  %v6010_v41 = vld [vmem:[#allocation2 + $0xb1] sm:$0xff] }
 0x111   : > { %v6008_v52 = vld [vmem:[#allocation2 + $0xb0] sm:$0xff]  ;;  %617 = vst.msk [vmem:[#allocation2 + $0xd0] sm:$0xff] %vm590_vm2, %v588_v38  ;;  %v2008_v38 = vld [vmem:[%s7526_s3 + $0x100] sm:$0xff] }
 0x112   : > { %7548 = vst [vmem:[#allocation7_spill] sm:$0xff] %v6008_v52  ;;  %4948 = vmatmul.mubr.msk.f32.gmra.mxu1 %vm590_vm2, %v6006_v39  ;;  %5008 = vmatprep.mubr.msk.f32.mxu0 %vm590_vm2, %v6008_v52  ;;  %v6035_v55 = vld [vmem:[#allocation2 + $0xc8] sm:$0xff] }
 0x113   : > { %4950 = vmatprep.mubr.msk.f32.mxu1 %vm590_vm2, %v6010_v41  ;;  %7551 = vst [vmem:[#allocation10_spill] sm:$0xff] %v6035_v55 }
 0x114   : > { %5009 = vmatmul.mubr.msk.f32.gmra.mxu0 %vm590_vm2, %v6019_v43  ;;  %v6023_v44 = vld [vmem:[#allocation2 + $0xb9] sm:$0xff]  ;;  %v6027_v49 = vld [vmem:[#allocation2 + $0xc1] sm:$0xff] }
 0x115   : > { %v6025_v48 = vld [vmem:[#allocation2 + $0xc0] sm:$0xff] }
 0x116   : > { %7550 = vst [vmem:[#allocation9_spill] sm:$0xff] %v6025_v48  ;;  %4951 = vmatmul.mubr.msk.f32.gmra.mxu1 %vm590_vm2, %v6023_v44  ;;  %5011 = vmatprep.mubr.msk.f32.mxu0 %vm590_vm2, %v6025_v48  ;;  %v6051_v63 = vld [vmem:[#allocation2 + $0xd8] sm:$0xff] }
 0x117   : > { %4953 = vmatprep.mubr.msk.f32.mxu1 %vm590_vm2, %v6027_v49  ;;  %7553 = vst [vmem:[#allocation12_spill] sm:$0xff] %v6051_v63  ;;  %v6057_v0 = vld [vmem:[#allocation2 + $0xd9] sm:$0xff] }
 0x118   : > { %5012 = vmatmul.mubr.msk.f32.gmra.mxu0 %vm590_vm2, %v6035_v55  ;;  %v6039_v56 = vld [vmem:[#allocation2 + $0xc9] sm:$0xff]  ;;  %v6043_v62 = vld [vmem:[#allocation2 + $0xd1] sm:$0xff] }
 0x119   : > { %v6041_v60 = vld [vmem:[#allocation2 + $0xd0] sm:$0xff] }
 0x11a   : > { %7552 = vst [vmem:[#allocation11_spill] sm:$0xff] %v6041_v60  ;;  %4954 = vmatmul.mubr.msk.f32.gmra.mxu1 %vm590_vm2, %v6039_v56  ;;  %5014 = vmatprep.mubr.msk.f32.mxu0 %vm590_vm2, %v6041_v60 }
 0x11b   : > { %4956 = vmatprep.mubr.msk.f32.mxu1 %vm590_vm2, %v6043_v62 }
 0x11c   : > { %5015 = vmatmul.mubr.msk.f32.gmra.mxu0 %vm590_vm2, %v6051_v63 }
 0x11d   : > { %5091 = vmatprep.mubr.msk.f32.mxu0 %vm590_vm2, %v5764_v22  ;;  %v2014_v22 = vld [vmem:[%s7526_s3 + $0x130] sm:$0xff] }
 0x11e   : > { %4957 = vmatmul.mubr.msk.f32.gmra.mxu1 %vm590_vm2, %v6057_v0 }
 0x11f   : > { %5033 = vmatprep.mubr.msk.f32.mxu1 %vm590_vm2, %v1274_v2  ;;  %v6146_v2 = vld [vmem:[#allocation2 + $0x52] sm:$0xff] }
 0x120   : > { %5092 = vmatmul.mubr.msk.f32.vlgmr.msra.gmra.mxu0 %vm590_vm2, %v5776_v27  ;;  %v2013_v27 = vld [vmem:[%s7526_s3 + $0x128] sm:$0xff] }
 0x121   : > { %5094 = vmatprep.mubr.msk.f32.mxu0 %vm590_vm2, %v5787_v33  ;;  %5192 = vmatpush3.msra.mxu0 %v2368_v17  ;;  %v6085_v33 = vld [vmem:[#allocation2 + $0x1a] sm:$0xff]  ;;  %v6110_v17 = vld [vmem:[#allocation2 + $0x32] sm:$0xff] }
 0x122   : > { %5034 = vmatmul.mubr.msk.f32.vlgmr.msra.gmra.mxu1 %vm590_vm2, %v1275_v10  ;;  %5193 = vmatprep.subr.mxu0 %v2367_v9  ;;  %v6157_v10 = vld [vmem:[#allocation2 + $0x5a] sm:$0xff] }
 0x123   : > { %5134 = vmatpush3.msra.mxu1 %v5892_v16  ;;  %5036 = vmatprep.mubr.msk.f32.mxu1 %vm590_vm2, %v6073_v11  ;;  %v2012_v16 = vld [vmem:[%s7526_s3 + $0x120] sm:$0xff] }
 0x124   : > { %5095 = vmatmul.mubr.msk.f32.gmra.mxu0 %vm590_vm2, %v5805_v40  ;;  %5135 = vmatprep.subr.mxu1 %v2014_v22  ;;  %v2011_v40 = vld [vmem:[%s7526_s3 + $0x118] sm:$0xff] }
 0x125   : > { %5097 = vmatprep.mubr.msk.f32.mxu0 %vm590_vm2, %v5816_v46  ;;  %5136 = vmatpush3.msra.mxu1 %v2014_v22  ;;  %v6103_v46 = vld [vmem:[#allocation2 + $0x2a] sm:$0xff] }
 0x126   : > { %5037 = vmatmul.mubr.msk.f32.gmra.mxu1 %vm590_vm2, %v6085_v33  ;;  %5137 = vmatprep.subr.mxu1 %v2013_v27  ;;  %v2363_v22 = vld [vmem:[%s7526_s3 + $0x150] sm:$0xff] }
 0x127   : > { %5039 = vmatprep.mubr.msk.f32.mxu1 %vm590_vm2, %v6092_v14  ;;  %5138 = vmatpush3.msra.mxu1 %v2013_v27  ;;  %v6164_v27 = vld [vmem:[#allocation2 + $0x62] sm:$0xff] }
 0x128   : > { %5098 = vmatmul.mubr.msk.f32.gmra.mxu0 %vm590_vm2, %v5828_v51  ;;  %5139 = vmatprep.subr.mxu1 %v2012_v16  ;;  %v2009_v51 = vld [vmem:[%s7526_s3 + $0x108] sm:$0xff] }
 0x129   : > { %5100 = vmatprep.mubr.msk.f32.mxu0 %vm590_vm2, %v5839_v58  ;;  %5140 = vmatpush3.msra.mxu1 %v2012_v16  ;;  %v6121_v58 = vld [vmem:[#allocation2 + $0x3a] sm:$0xff]  ;;  %v2362_v16 = vld [vmem:[%s7526_s3 + $0x148] sm:$0xff] }
 0x12a   : > { %5040 = vmatmul.mubr.msk.f32.gmra.mxu1 %vm590_vm2, %v6103_v46  ;;  %5141 = vmatprep.subr.mxu1 %v2011_v40 }
 0x12b   : > { %5042 = vmatprep.mubr.msk.f32.mxu1 %vm590_vm2, %v6110_v17  ;;  %5142 = vmatpush3.msra.mxu1 %v2011_v40  ;;  %v6175_v40 = vld [vmem:[#allocation2 + $0x6a] sm:$0xff] }
 0x12c   : > { %5101 = vmatmul.mubr.msk.f32.gmra.mxu0 %vm590_vm2, %v5857_v1  ;;  %5143 = vmatprep.subr.mxu1 %v2010_v15  ;;  %v2365_v1 = vld [vmem:[%s7526_s3 + $0x160] sm:$0xff] }
 0x12d   : > { %5103 = vmatprep.mubr.msk.f32.mxu0 %vm590_vm2, %v5868_v7  ;;  %5144 = vmatpush3.msra.mxu1 %v2010_v15  ;;  %v2721_v15 = vld [vmem:[%s7526_s3 + $0x1b8] sm:$0xff] }
 0x12e   : > { %5043 = vmatmul.mubr.msk.f32.gmra.mxu1 %vm590_vm2, %v6121_v58  ;;  %5194 = vmatpush3.msra.mxu0 %v2367_v9  ;;  %v2364_v9 = vld [vmem:[%s7526_s3 + $0x158] sm:$0xff] }
 0x12f   : > { %5045 = vmatprep.mubr.msk.f32.mxu1 %vm590_vm2, %v6128_v29  ;;  %5145 = vmatprep.subr.mxu1 %v2009_v51 }
 0x130   : > { %5104 = vmatmul.mubr.msk.f32.gmra.mxu0 %vm590_vm2, %v5880_v12  ;;  %5195 = vmatprep.subr.mxu0 %v2366_v21 }
 0x131   : > { %5106 = vmatprep.mubr.msk.f32.mxu0 %vm590_vm2, %v5896_v19  ;;  %5146 = vmatpush3.msra.mxu1 %v2009_v51  ;;  %v6182_v51 = vld [vmem:[#allocation2 + $0x72] sm:$0xff] }
 0x132   : > { %5046 = vmatmul.mubr.msk.f32.gmra.mxu1 %vm590_vm2, %v6139_v30  ;;  %5196 = vmatpush3.msra.mxu0 %v2366_v21  ;;  %v2361_v21 = vld [vmem:[%s7526_s3 + $0x140] sm:$0xff] }
 0x133   : > { %5048 = vmatprep.mubr.msk.f32.mxu1 %vm590_vm2, %v6146_v2  ;;  %5197 = vmatprep.subr.mxu0 %v2365_v1 }
 0x134   : > { %5107 = vmatmul.mubr.msk.f32.gmra.mxu0 %vm590_vm2, %v5908_v26  ;;  %5147 = vmatprep.subr.mxu1 %v2008_v38 }
 0x135   : > { %5109 = vmatprep.mubr.msk.f32.mxu0 %vm590_vm2, %v5920_v36  ;;  %5198 = vmatpush3.msra.mxu0 %v2365_v1  ;;  %v6193_v1 = vld [vmem:[#allocation2 + $0x7a] sm:$0xff] }
 0x136   : > { %5049 = vmatmul.mubr.msk.f32.gmra.mxu1 %vm590_vm2, %v6157_v10  ;;  %5199 = vmatprep.subr.mxu0 %v2364_v9 }
 0x137   : > { %5051 = vmatprep.mubr.msk.f32.mxu1 %vm590_vm2, %v6164_v27  ;;  %5200 = vmatpush3.msra.mxu0 %v2364_v9  ;;  %v3074_v9 = vld [vmem:[%s7526_s3 + $0x1f8] sm:$0xff] }
 0x138   : > { %5110 = vmatmul.mubr.msk.f32.gmra.mxu0 %vm590_vm2, %v5932_v42  ;;  %5201 = vmatprep.subr.mxu0 %v2363_v22 }
 0x139   : > { %5112 = vmatprep.mubr.msk.f32.mxu0 %vm590_vm2, %v5943_v53  ;;  %5202 = vmatpush3.msra.mxu0 %v2363_v22  ;;  %v6208_v22 = vld [vmem:[#allocation2 + $0x8a] sm:$0xff] }
 0x13a   : > { %5052 = vmatmul.mubr.msk.f32.gmra.mxu1 %vm590_vm2, %v6175_v40  ;;  %5203 = vmatprep.subr.mxu0 %v2362_v16 }
 0x13b   : > { %5054 = vmatprep.mubr.msk.f32.mxu1 %vm590_vm2, %v6182_v51  ;;  %5148 = vmatpush3.msra.mxu1 %v2008_v38  ;;  %v6200_v38 = vld [vmem:[#allocation2 + $0x82] sm:$0xff] }
 0x13c   : > { %5113 = vmatmul.mubr.msk.f32.gmra.mxu0 %vm590_vm2, %v5955_v61  ;;  %5249 = vmatprep.subr.mxu1 %v2721_v15 }
 0x13d   : > { %5115 = vmatprep.mubr.msk.f32.mxu0 %vm590_vm2, %v5966_v4  ;;  %5204 = vmatpush3.msra.mxu0 %v2362_v16  ;;  %v6212_v16 = vld [vmem:[#allocation2 + $0x92] sm:$0xff]  ;;  %v6256_v4 = vld [vmem:[#allocation2 + $0xca] sm:$0xff] }
 0x13e   : > { %5055 = vmatmul.mubr.msk.f32.gmra.mxu1 %vm590_vm2, %v6193_v1  ;;  %5205 = vmatprep.subr.mxu0 %v2361_v21 }
 0x13f   : > { %5057 = vmatprep.mubr.msk.f32.mxu1 %vm590_vm2, %v6200_v38  ;;  %5206 = vmatpush3.msra.mxu0 %v2361_v21  ;;  %v6220_v21 = vld [vmem:[#allocation2 + $0x9a] sm:$0xff] }
 0x140   : > { %5116 = vmatmul.mubr.msk.f32.gmra.mxu0 %vm590_vm2, %v5978_v13  ;;  %5307 = vmatprep.subr.mxu0 %v3074_v9  ;;  %v6250_v13 = vld [vmem:[#allocation2 + $0xe0] sm:$0xff] }
 0x141   : > { %5118 = vmatprep.mubr.msk.f32.mxu0 %vm590_vm2, %v5989_v25  ;;  %v6224_v25 = vld [vmem:[#allocation2 + $0xa2] sm:$0xff]  ;;  %7554 = vst [vmem:[#allocation13_spill] sm:$0xff] %v6250_v13 }
 0x142   : > { %5058 = vmatmul.mubr.msk.f32.gmra.mxu1 %vm590_vm2, %v6208_v22 }
 0x143   : > { %5060 = vmatprep.mubr.msk.f32.mxu1 %vm590_vm2, %v6212_v16 }
 0x144   : > { %5119 = vmatmul.mubr.msk.f32.gmra.mxu0 %vm590_vm2, %v6001_v31  ;;  %v6232_v31 = vld [vmem:[#allocation2 + $0xaa] sm:$0xff] }
 0x145   : > { %5121 = vmatprep.mubr.msk.f32.mxu0 %vm590_vm2, %v6008_v52  ;;  %v6236_v52 = vld [vmem:[#allocation2 + $0xb2] sm:$0xff] }
 0x146   : > { %5061 = vmatmul.mubr.msk.f32.gmra.mxu1 %vm590_vm2, %v6220_v21 }
 0x147   : > { %5063 = vmatprep.mubr.msk.f32.mxu1 %vm590_vm2, %v6224_v25 }
 0x148   : > { %5122 = vmatmul.mubr.msk.f32.gmra.mxu0 %vm590_vm2, %v6019_v43  ;;  %v6244_v43 = vld [vmem:[#allocation2 + $0xba] sm:$0xff] }
 0x149   : > { %5124 = vmatprep.mubr.msk.f32.mxu0 %vm590_vm2, %v6025_v48  ;;  %v6248_v48 = vld [vmem:[#allocation2 + $0xc2] sm:$0xff] }
 0x14a   : > { %5064 = vmatmul.mubr.msk.f32.gmra.mxu1 %vm590_vm2, %v6232_v31 }
 0x14b   : > { %5066 = vmatprep.mubr.msk.f32.mxu1 %vm590_vm2, %v6236_v52 }
 0x14c   : > { %5125 = vmatmul.mubr.msk.f32.gmra.mxu0 %vm590_vm2, %v6035_v55  ;;  %v6264_v55 = vld [vmem:[#allocation2 + $0xd2] sm:$0xff] }
 0x14d   : > { %5127 = vmatprep.mubr.msk.f32.mxu0 %vm590_vm2, %v6041_v60  ;;  %v6260_v60 = vld [vmem:[#allocation2 + $0xe8] sm:$0xff] }
 0x14e   : > { %5067 = vmatmul.mubr.msk.f32.gmra.mxu1 %vm590_vm2, %v6244_v43 }
 0x14f   : > { %5069 = vmatprep.mubr.msk.f32.mxu1 %vm590_vm2, %v6248_v48 }
 0x150   : > { %5128 = vmatmul.mubr.msk.f32.gmra.mxu0 %vm590_vm2, %v6051_v63  ;;  %v6272_v63 = vld [vmem:[#allocation2 + $0xda] sm:$0xff] }
 0x151   : > { %5130 = vmatprep.mubr.msk.f32.mxu0 %vm590_vm2, %v6250_v13  ;;  %v3073_v13 = vld [vmem:[%s7526_s3 + $0x1f0] sm:$0xff] }
 0x152   : > { %5070 = vmatmul.mubr.msk.f32.gmra.mxu1 %vm590_vm2, %v6256_v4 }
 0x153   : > { %5072 = vmatprep.mubr.msk.f32.mxu1 %vm590_vm2, %v6264_v55 }
 0x154   : > { %5131 = vmatmul.mubr.msk.f32.gmra.mxu0 %vm590_vm2, %v6260_v60 }
 0x155   : > { %5207 = vmatprep.mubr.msk.f32.mxu0 %vm590_vm2, %v6073_v11  ;;  %v2720_v11 = vld [vmem:[%s7526_s3 + $0x1b0] sm:$0xff] }
 0x156   : > { %5073 = vmatmul.mubr.msk.f32.gmra.mxu1 %vm590_vm2, %v6272_v63 }
 0x157   : > { %5149 = vmatprep.mubr.msk.f32.mxu1 %vm590_vm2, %v5766_v23  ;;  %v2719_v23 = vld [vmem:[%s7526_s3 + $0x1a8] sm:$0xff] }
 0x158   : > { %5208 = vmatmul.mubr.msk.f32.vlgmr.msra.gmra.mxu0 %vm590_vm2, %v6085_v33  ;;  %v2715_v33 = vld [vmem:[%s7526_s3 + $0x188] sm:$0xff] }
 0x159   : > { %5210 = vmatprep.mubr.msk.f32.mxu0 %vm590_vm2, %v6092_v14  ;;  %5308 = vmatpush3.msra.mxu0 %v3074_v9  ;;  %v3070_v9 = vld [vmem:[%s7526_s3 + $0x1d8] sm:$0xff] }
 0x15a   : > { %5150 = vmatmul.mubr.msk.f32.vlgmr.msra.gmra.mxu1 %vm590_vm2, %v5785_v32  ;;  %5309 = vmatprep.subr.mxu0 %v3073_v13  ;;  %v2718_v32 = vld [vmem:[%s7526_s3 + $0x1a0] sm:$0xff] }
 0x15b   : > { %5250 = vmatpush3.msra.mxu1 %v2721_v15  ;;  %5152 = vmatprep.mubr.msk.f32.mxu1 %vm590_vm2, %v5789_v34  ;;  %v2717_v34 = vld [vmem:[%s7526_s3 + $0x198] sm:$0xff]  ;;  %v3071_v15 = vld [vmem:[%s7526_s3 + $0x1e0] sm:$0xff] }
 0x15c   : > { %5211 = vmatmul.mubr.msk.f32.gmra.mxu0 %vm590_vm2, %v6103_v46  ;;  %5251 = vmatprep.subr.mxu1 %v2720_v11 }
 0x15d   : > { %5213 = vmatprep.mubr.msk.f32.mxu0 %vm590_vm2, %v6110_v17  ;;  %5252 = vmatpush3.msra.mxu1 %v2720_v11  ;;  %v3069_v11 = vld [vmem:[%s7526_s3 + $0x1d0] sm:$0xff] }
 0x15e   : > { %5153 = vmatmul.mubr.msk.f32.gmra.mxu1 %vm590_vm2, %v5814_v45  ;;  %5253 = vmatprep.subr.mxu1 %v2719_v23  ;;  %v2716_v45 = vld [vmem:[%s7526_s3 + $0x190] sm:$0xff] }
 0x15f   : > { %5155 = vmatprep.mubr.msk.f32.mxu1 %vm590_vm2, %v5818_v47  ;;  %5254 = vmatpush3.msra.mxu1 %v2719_v23  ;;  %v3068_v23 = vld [vmem:[%s7526_s3 + $0x1c8] sm:$0xff] }
 0x160   : > { %5214 = vmatmul.mubr.msk.f32.gmra.mxu0 %vm590_vm2, %v6121_v58  ;;  %5255 = vmatprep.subr.mxu1 %v2718_v32 }
 0x161   : > { %5216 = vmatprep.mubr.msk.f32.mxu0 %vm590_vm2, %v6128_v29  ;;  %5256 = vmatpush3.msra.mxu1 %v2718_v32  ;;  %v3427_v32 = vld [vmem:[%s7526_s3 + $0x238] sm:$0xff] }
 0x162   : > { %5156 = vmatmul.mubr.msk.f32.gmra.mxu1 %vm590_vm2, %v5837_v57  ;;  %5257 = vmatprep.subr.mxu1 %v2717_v34  ;;  %v3072_v57 = vld [vmem:[%s7526_s3 + $0x1e8] sm:$0xff] }
 0x163   : > { %5158 = vmatprep.mubr.msk.f32.mxu1 %vm590_vm2, %v5841_v59  ;;  %5258 = vmatpush3.msra.mxu1 %v2717_v34  ;;  %v3067_v34 = vld [vmem:[%s7526_s3 + $0x1c0] sm:$0xff] }
 0x164   : > { %5217 = vmatmul.mubr.msk.f32.gmra.mxu0 %vm590_vm2, %v6139_v30  ;;  %5259 = vmatprep.subr.mxu1 %v2716_v45 }
 0x165   : > { %5219 = vmatprep.mubr.msk.f32.mxu0 %vm590_vm2, %v6146_v2  ;;  %5260 = vmatpush3.msra.mxu1 %v2716_v45  ;;  %v6417_v45 = vld [vmem:[#allocation2 + $0xe2] sm:$0xff] }
 0x166   : > { %5159 = vmatmul.mubr.msk.f32.gmra.mxu1 %vm590_vm2, %v5866_v6  ;;  %5310 = vmatpush3.msra.mxu0 %v3073_v13  ;;  %v2714_v13 = vld [vmem:[%s7526_s3 + $0x180] sm:$0xff] }
 0x167   : > { %5161 = vmatprep.mubr.msk.f32.mxu1 %vm590_vm2, %v5870_v8  ;;  %5261 = vmatprep.subr.mxu1 %v2715_v33 }
 0x168   : > { %5220 = vmatmul.mubr.msk.f32.gmra.mxu0 %vm590_vm2, %v6157_v10  ;;  %5311 = vmatprep.subr.mxu0 %v3072_v57 }
 0x169   : > { %5222 = vmatprep.mubr.msk.f32.mxu0 %vm590_vm2, %v6164_v27  ;;  %5262 = vmatpush3.msra.mxu1 %v2715_v33  ;;  %v6423_v33 = vld [vmem:[#allocation2 + $0xe1] sm:$0xff] }
 0x16a   : > { %5162 = vmatmul.mubr.msk.f32.gmra.mxu1 %vm590_vm2, %v5894_v18  ;;  %5312 = vmatpush3.msra.mxu0 %v3072_v57  ;;  %v6427_v57 = vld [vmem:[#allocation2 + $0xea] sm:$0xff] }
 0x16b   : > { %5164 = vmatprep.mubr.msk.f32.mxu1 %vm590_vm2, %v5898_v20  ;;  %5313 = vmatprep.subr.mxu0 %v3071_v15  ;;  %7555 = vst [vmem:[#allocation14_spill] sm:$0xff] %v6427_v57 }
 0x16c   : > { %5223 = vmatmul.mubr.msk.f32.gmra.mxu0 %vm590_vm2, %v6175_v40  ;;  %5263 = vmatprep.subr.mxu1 %v2714_v13 }
 0x16d   : > { %5225 = vmatprep.mubr.msk.f32.mxu0 %vm590_vm2, %v6182_v51  ;;  %5314 = vmatpush3.msra.mxu0 %v3071_v15  ;;  %v6433_v15 = vld [vmem:[#allocation2 + $0xe9] sm:$0xff] }
 0x16e   : > { %5165 = vmatmul.mubr.msk.f32.gmra.mxu1 %vm590_vm2, %v5918_v35  ;;  %5315 = vmatprep.subr.mxu0 %v3070_v9 }
 0x16f   : > { %5167 = vmatprep.mubr.msk.f32.mxu1 %vm590_vm2, %v5922_v37  ;;  %5316 = vmatpush3.msra.mxu0 %v3070_v9  ;;  %v2686_v9 = vld [vmem:[#allocation2 + $0x20] sm:$0xff] }
 0x170   : > { %5226 = vmatmul.mubr.msk.f32.gmra.mxu0 %vm590_vm2, %v6193_v1  ;;  %5317 = vmatprep.subr.mxu0 %v3069_v11 }
 0x171   : > { %5228 = vmatprep.mubr.msk.f32.mxu0 %vm590_vm2, %v6200_v38  ;;  %5318 = vmatpush3.msra.mxu0 %v3069_v11  ;;  %v3040_v11 = vld [vmem:[#allocation2 + $0x29] sm:$0xff] }
 0x172   : > { %5168 = vmatmul.mubr.msk.f32.gmra.mxu1 %vm590_vm2, %v5941_v50  ;;  %5319 = vmatprep.subr.mxu0 %v3068_v23 }
 0x173   : > { %5170 = vmatprep.mubr.msk.f32.mxu1 %vm590_vm2, %v5945_v54  ;;  %5264 = vmatpush3.msra.mxu1 %v2714_v13  ;;  %v3039_v13 = vld [vmem:[#allocation2 + $0x21] sm:$0xff] }
 0x174   : > { %5229 = vmatmul.mubr.msk.f32.gmra.mxu0 %vm590_vm2, %v6208_v22  ;;  %5365 = vmatprep.subr.mxu1 %v3427_v32 }
 0x175   : > { %5231 = vmatprep.mubr.msk.f32.mxu0 %vm590_vm2, %v6212_v16  ;;  %5320 = vmatpush3.msra.mxu0 %v3068_v23  ;;  %v2687_v23 = vld [vmem:[#allocation2 + $0x28] sm:$0xff] }
 0x176   : > { %5171 = vmatmul.mubr.msk.f32.gmra.mxu1 %vm590_vm2, %v5964_v3  ;;  %5321 = vmatprep.subr.mxu0 %v3067_v34 }
 0x177   : > { %5173 = vmatprep.mubr.msk.f32.mxu1 %vm590_vm2, %v5968_v5  ;;  %5322 = vmatpush3.msra.mxu0 %v3067_v34  ;;  %v3426_v34 = vld [vmem:[%s7526_s3 + $0x230] sm:$0xff] }
 0x178   : > { %5232 = vmatmul.mubr.msk.f32.gmra.mxu0 %vm590_vm2, %v6220_v21 }
 0x179   : > { %5234 = vmatprep.mubr.msk.f32.mxu0 %vm590_vm2, %v6224_v25 }
 0x17a   : > { %5174 = vmatmul.mubr.msk.f32.gmra.mxu1 %vm590_vm2, %v5987_v24 }
 0x17b   : > { %5176 = vmatprep.mubr.msk.f32.mxu1 %vm590_vm2, %v5991_v28 }
 0x17c   : > { %5235 = vmatmul.mubr.msk.f32.gmra.mxu0 %vm590_vm2, %v6232_v31 }
 0x17d   : > { %5237 = vmatprep.mubr.msk.f32.mxu0 %vm590_vm2, %v6236_v52 }
 0x17e   : > { %5177 = vmatmul.mubr.msk.f32.gmra.mxu1 %vm590_vm2, %v6006_v39 }
 0x17f   : > { %5179 = vmatprep.mubr.msk.f32.mxu1 %vm590_vm2, %v6010_v41 }
 0x180   : > { %5238 = vmatmul.mubr.msk.f32.gmra.mxu0 %vm590_vm2, %v6244_v43 }
 0x181   : > { %5240 = vmatprep.mubr.msk.f32.mxu0 %vm590_vm2, %v6248_v48 }
 0x182   : > { %5180 = vmatmul.mubr.msk.f32.gmra.mxu1 %vm590_vm2, %v6023_v44 }
 0x183   : > { %5182 = vmatprep.mubr.msk.f32.mxu1 %vm590_vm2, %v6027_v49 }
 0x184   : > { %5241 = vmatmul.mubr.msk.f32.gmra.mxu0 %vm590_vm2, %v6256_v4 }
 0x185   : > { %5243 = vmatprep.mubr.msk.f32.mxu0 %vm590_vm2, %v6264_v55 }
 0x186   : > { %5183 = vmatmul.mubr.msk.f32.gmra.mxu1 %vm590_vm2, %v6039_v56 }
 0x187   : > { %5185 = vmatprep.mubr.msk.f32.mxu1 %vm590_vm2, %v6043_v62 }
 0x188   : > { %5244 = vmatmul.mubr.msk.f32.gmra.mxu0 %vm590_vm2, %v6272_v63 }
 0x189   : > { %5246 = vmatprep.mubr.msk.f32.mxu0 %vm590_vm2, %v6417_v45 }
 0x18a   : > { %5186 = vmatmul.mubr.msk.f32.gmra.mxu1 %vm590_vm2, %v6057_v0 }
 0x18b   : > { %5188 = vmatprep.mubr.msk.f32.mxu1 %vm590_vm2, %v6423_v33 }
 0x18c   : > { %5247 = vmatmul.mubr.msk.f32.gmra.mxu0 %vm590_vm2, %v6427_v57  ;;  %v3042_v57 = vld [vmem:[#allocation2 + $0x39] sm:$0xff] }
 0x18d   : > { %5323 = vmatprep.mubr.msk.f32.mxu0 %vm590_vm2, %v3039_v13  ;;  %v2688_v13 = vld [vmem:[#allocation2 + $0x30] sm:$0xff] }
 0x18e   : > { %5189 = vmatmul.mubr.msk.f32.gmra.mxu1 %vm590_vm2, %v6433_v15 }
 0x18f   : > { %5265 = vmatprep.mubr.msk.f32.mxu1 %vm590_vm2, %v2686_v9  ;;  %v3425_v9 = vld [vmem:[%s7526_s3 + $0x228] sm:$0xff] }
 0x190   : > { %5324 = vmatmul.mubr.msk.f32.vlgmr.msra.gmra.mxu0 %vm590_vm2, %v3040_v11  ;;  %v3424_v11 = vld [vmem:[%s7526_s3 + $0x220] sm:$0xff] }
 0x191   : > { %5326 = vmatprep.mubr.msk.f32.mxu0 %vm590_vm2, %v5818_v47  ;;  %v2689_v47 = vld [vmem:[#allocation2 + $0x38] sm:$0xff] }
 0x192   : > { %5266 = vmatmul.mubr.msk.f32.vlgmr.msra.gmra.mxu1 %vm590_vm2, %v2687_v23  ;;  %v3422_v23 = vld [vmem:[%s7526_s3 + $0x210] sm:$0xff] }
 0x193   : > { %5366 = vmatpush3.msra.mxu1 %v3427_v32  ;;  %5268 = vmatprep.mubr.msk.f32.mxu1 %vm590_vm2, %v2688_v13  ;;  %v2690_v32 = vld [vmem:[#allocation2 + $0x40] sm:$0xff] }
 0x194   : > { %5327 = vmatmul.mubr.msk.f32.gmra.mxu0 %vm590_vm2, %v3042_v57  ;;  %5367 = vmatprep.subr.mxu1 %v3426_v34  ;;  %v3423_v57 = vld [vmem:[%s7526_s3 + $0x218] sm:$0xff] }
 0x195   : > { %5329 = vmatprep.mubr.msk.f32.mxu0 %vm590_vm2, %v5841_v59  ;;  %5368 = vmatpush3.msra.mxu1 %v3426_v34  ;;  %v2691_v59 = vld [vmem:[#allocation2 + $0x48] sm:$0xff]  ;;  %v7559_v34 = vld [vmem:[#allocation6_spill] sm:$0xff] }
 0x196   : > { %5269 = vmatmul.mubr.msk.f32.gmra.mxu1 %vm590_vm2, %v2689_v47  ;;  %5369 = vmatprep.subr.mxu1 %v3425_v9 }
 0x197   : > { %5271 = vmatprep.mubr.msk.f32.mxu1 %vm590_vm2, %v2690_v32  ;;  %5370 = vmatpush3.msra.mxu1 %v3425_v9  ;;  %v7560_v9 = vld [vmem:[#allocation7_spill] sm:$0xff] }
 0x198   : > { %5330 = vmatmul.mubr.msk.f32.gmra.mxu0 %vm590_vm2, %v5866_v6  ;;  %5371 = vmatprep.subr.mxu1 %v3424_v11  ;;  %v3421_v6 = vld [vmem:[%s7526_s3 + $0x208] sm:$0xff] }
 0x199   : > { %5332 = vmatprep.mubr.msk.f32.mxu0 %vm590_vm2, %v5870_v8  ;;  %5372 = vmatpush3.msra.mxu1 %v3424_v11  ;;  %v3420_v8 = vld [vmem:[%s7526_s3 + $0x200] sm:$0xff] }
 0x19a   : > { %5272 = vmatmul.mubr.msk.f32.gmra.mxu1 %vm590_vm2, %v2691_v59  ;;  %5373 = vmatprep.subr.mxu1 %v3423_v57 }
 0x19b   : > { %5274 = vmatprep.mubr.msk.f32.mxu1 %vm590_vm2, %v5868_v7  ;;  %5374 = vmatpush3.msra.mxu1 %v3423_v57  ;;  %v7561_v57 = vld [vmem:[#allocation8_spill] sm:$0xff] }
 0x19c   : > { %5333 = vmatmul.mubr.msk.f32.gmra.mxu0 %vm590_vm2, %v5894_v18  ;;  %5375 = vmatprep.subr.mxu1 %v3422_v23 }
 0x19d   : > { %5335 = vmatprep.mubr.msk.f32.mxu0 %vm590_vm2, %v5898_v20  ;;  %5376 = vmatpush3.msra.mxu1 %v3422_v23  ;;  %v7556_v20 = vld [vmem:[#allocation3_spill] sm:$0xff]  ;;  %v7562_v23 = vld [vmem:[#allocation9_spill] sm:$0xff] }
 0x19e   : > { %5275 = vmatmul.mubr.msk.f32.gmra.mxu1 %vm590_vm2, %v5880_v12  ;;  %5377 = vmatprep.subr.mxu1 %v3421_v6 }
 0x19f   : > { %5277 = vmatprep.mubr.msk.f32.mxu1 %vm590_vm2, %v5896_v19  ;;  %5378 = vmatpush3.msra.mxu1 %v3421_v6 }
 0x1a0   : > { %5336 = vmatmul.mubr.msk.f32.gmra.mxu0 %vm590_vm2, %v5918_v35  ;;  %5379 = vmatprep.subr.mxu1 %v3420_v8 }
 0x1a1   : > { %5338 = vmatprep.mubr.msk.f32.mxu0 %vm590_vm2, %v5922_v37  ;;  %5380 = vmatpush3.msra.mxu1 %v3420_v8 }
 0x1a2   : > { %5278 = vmatmul.mubr.msk.f32.gmra.mxu1 %vm590_vm2, %v5908_v26 }
 0x1a3   : > { %5280 = vmatprep.mubr.msk.f32.mxu1 %vm590_vm2, %v5920_v36 }
 0x1a4   : > { %5339 = vmatmul.mubr.msk.f32.gmra.mxu0 %vm590_vm2, %v5941_v50  ;;  %v7557_v50 = vld [vmem:[#allocation4_spill] sm:$0xff] }
 0x1a5   : > { %5341 = vmatprep.mubr.msk.f32.mxu0 %vm590_vm2, %v5945_v54  ;;  %v7558_v54 = vld [vmem:[#allocation5_spill] sm:$0xff] }
 0x1a6   : > { %5281 = vmatmul.mubr.msk.f32.gmra.mxu1 %vm590_vm2, %v5932_v42 }
 0x1a7   : > { %v4977_v7 = vpop.f32.mrf.mxu0  ;;  %5283 = vmatprep.mubr.msk.f32.mxu1 %vm590_vm2, %v5943_v53 }
 0x1a8   : > { %5342 = vmatmul.mubr.msk.f32.gmra.mxu0 %vm590_vm2, %v5964_v3 }
 0x1a9   : > { %5344 = vmatprep.mubr.msk.f32.mxu0 %vm590_vm2, %v5968_v5  ;;  %v1135_v12 = vpop.f32.mrf.mxu0  ;;  %v4919_v18 = vpop.f32.mrf.mxu1 }
 0x1aa   : > { %5284 = vmatmul.mubr.msk.f32.gmra.mxu1 %vm590_vm2, %v5955_v61  ;;  %v6509_v19 = vadd.f32 %v4977_v7, %v4919_v18 }
 0x1ab   : > { %5286 = vmatprep.mubr.msk.f32.mxu1 %vm590_vm2, %v7556_v20  ;;  %v4980_v26 = vpop.f32.mrf.mxu0  ;;  %v846_v35 = vpop.f32.mrf.mxu1  ;;  %v7564_v20 = vld [vmem:[#allocation11_spill] sm:$0xff] }
 0x1ac   : > { %5345 = vmatmul.mubr.msk.f32.gmra.mxu0 %vm590_vm2, %v5987_v24  ;;  %v6515_v36 = vadd.f32 %v1135_v12, %v846_v35  ;;  %v7563_v12 = vld [vmem:[#allocation10_spill] sm:$0xff] }
 0x1ad   : > { %5347 = vmatprep.mubr.msk.f32.mxu0 %vm590_vm2, %v5991_v28  ;;  %v1145_v37 = vpop.f32.mrf.mxu0 }
 0x1ae   : > { %v4922_v42 = vpop.f32.mrf.mxu1  ;;  %5287 = vmatmul.mubr.msk.f32.gmra.mxu1 %vm590_vm2, %v7557_v50  ;;  %v3065_v50 = vld [vmem:[#allocation2 + $0xf1] sm:$0xff] }
 0x1af   : > { %v6521_v53 = vadd.f32 %v4980_v26, %v4922_v42  ;;  %5289 = vmatprep.mubr.msk.f32.mxu1 %vm590_vm2, %v7558_v54  ;;  %v7565_v42 = vld [vmem:[#allocation12_spill] sm:$0xff] }
 0x1b0   : > { %v4983_v61 = vpop.f32.mrf.mxu0  ;;  %5348 = vmatmul.mubr.msk.f32.gmra.mxu0 %vm590_vm2, %v6006_v39  ;;  %v856_v3 = vpop.f32.mrf.mxu1 }
 0x1b1   : > { %v6527_v5 = vadd.f32 %v1145_v37, %v856_v3  ;;  %5350 = vmatprep.mubr.msk.f32.mxu0 %vm590_vm2, %v6010_v41 }
 0x1b2   : > { %v1155_v24 = vpop.f32.mrf.mxu0  ;;  %v4925_v28 = vpop.f32.mrf.mxu1  ;;  %5290 = vmatmul.mubr.msk.f32.gmra.mxu1 %vm590_vm2, %v7559_v34 }
 0x1b3   : > { %v6533_v13 = vadd.f32 %v4983_v61, %v4925_v28  ;;  %5292 = vmatprep.mubr.msk.f32.mxu1 %vm590_vm2, %v7560_v9  ;;  %v7566_v61 = vld [vmem:[#allocation13_spill] sm:$0xff] }
 0x1b4   : > { %v4986_v47 = vpop.f32.mrf.mxu0  ;;  %5351 = vmatmul.mubr.msk.f32.gmra.mxu0 %vm590_vm2, %v6023_v44  ;;  %v866_v39 = vpop.f32.mrf.mxu1 }
 0x1b5   : > { %v6539_v11 = vadd.f32 %v1155_v24, %v866_v39  ;;  %5353 = vmatprep.mubr.msk.f32.mxu0 %vm590_vm2, %v6027_v49  ;;  %v2713_v39 = vld [vmem:[#allocation2 + $0xf8] sm:$0xff] }
 0x1b6   : > { %v1165_v41 = vpop.f32.mrf.mxu0  ;;  %v4928_v32 = vpop.f32.mrf.mxu1  ;;  %5293 = vmatmul.mubr.msk.f32.gmra.mxu1 %vm590_vm2, %v7561_v57 }
 0x1b7   : > { %v6545_v59 = vadd.f32 %v4986_v47, %v4928_v32  ;;  %5295 = vmatprep.mubr.msk.f32.mxu1 %vm590_vm2, %v7562_v23 }
 0x1b8   : > { %v4989_v6 = vpop.f32.mrf.mxu0  ;;  %5354 = vmatmul.mubr.msk.f32.gmra.mxu0 %vm590_vm2, %v6039_v56  ;;  %v876_v44 = vpop.f32.mrf.mxu1 }
 0x1b9   : > { %v6551_v8 = vadd.f32 %v1165_v41, %v876_v44  ;;  %5356 = vmatprep.mubr.msk.f32.mxu0 %vm590_vm2, %v6043_v62 }
 0x1ba   : > { %v1175_v49 = vpop.f32.mrf.mxu0  ;;  %v4931_v7 = vpop.f32.mrf.mxu1  ;;  %5296 = vmatmul.mubr.msk.f32.gmra.mxu1 %vm590_vm2, %v7563_v12 }
 0x1bb   : > { %v6557_v18 = vadd.f32 %v4989_v6, %v4931_v7  ;;  %5298 = vmatprep.mubr.msk.f32.mxu1 %vm590_vm2, %v7564_v20 }
 0x1bc   : > { %v4992_v26 = vpop.f32.mrf.mxu0  ;;  %5357 = vmatmul.mubr.msk.f32.gmra.mxu0 %vm590_vm2, %v6057_v0  ;;  %v886_v56 = vpop.f32.mrf.mxu1  ;;  %v2712_v0 = vld [vmem:[#allocation2 + $0xf0] sm:$0xff] }
 0x1bd   : > { %v6563_v35 = vadd.f32 %v1175_v49, %v886_v56  ;;  %5359 = vmatprep.mubr.msk.f32.mxu0 %vm590_vm2, %v6423_v33  ;;  %v3066_v33 = vld [vmem:[#allocation2 + $0xf9] sm:$0xff] }
 0x1be   : > { %v1185_v62 = vpop.f32.mrf.mxu0  ;;  %v4934_v37 = vpop.f32.mrf.mxu1  ;;  %5299 = vmatmul.mubr.msk.f32.gmra.mxu1 %vm590_vm2, %v7565_v42 }
 0x1bf   : > { %v6569_v54 = vadd.f32 %v4992_v26, %v4934_v37  ;;  %5301 = vmatprep.mubr.msk.f32.mxu1 %vm590_vm2, %v7566_v61 }
 0x1c0   : > { %v4995_v3 = vpop.f32.mrf.mxu0  ;;  %v896_v24 = vpop.f32.mrf.mxu1  ;;  %5360 = vmatmul.mubr.msk.f32.gmra.mxu0 %vm590_vm2, %v6433_v15 }
 0x1c1   : > { %v6575_v28 = vadd.f32 %v1185_v62, %v896_v24  ;;  %5362 = vmatprep.mubr.msk.f32.mxu0 %vm590_vm2, %v3065_v50 }
 0x1c2   : > { %v1195_v34 = vpop.f32.mrf.mxu0  ;;  %v4937_v9 = vpop.f32.mrf.mxu1  ;;  %5302 = vmatmul.mubr.msk.f32.gmra.mxu1 %vm590_vm2, %v6260_v60 }
 0x1c3   : > { %v6580_v47 = vadd.f32 %v4995_v3, %v4937_v9  ;;  %5304 = vmatprep.mubr.msk.f32.mxu1 %vm590_vm2, %v2712_v0 }
 0x1c4   : > { %v4998_v41 = vpop.f32.mrf.mxu0  ;;  %v906_v32 = vpop.f32.mrf.mxu1  ;;  %5363 = vmatmul.mubr.msk.f32.gmra.mxu0 %vm590_vm2, %v3066_v33 }
 0x1c5   : > { %v6584_v15 = vadd.f32 %v1195_v34, %v906_v32 }
 0x1c6   : > { %v1205_v57 = vpop.f32.mrf.mxu0  ;;  %v4940_v23 = vpop.f32.mrf.mxu1  ;;  %5305 = vmatmul.mubr.msk.f32.gmra.mxu1 %vm590_vm2, %v2713_v39 }
 0x1c7   : > { %v6587_v6 = vadd.f32 %v4998_v41, %v4940_v23  ;;  %5381 = vmatprep.mubr.msk.f32.mxu1 %vm590_vm2, %v6092_v14 }
 0x1c8   : > { %v5001_v60 = vpop.f32.mrf.mxu0  ;;  %v916_v44 = vpop.f32.mrf.mxu1 }
 0x1c9   : > { %v6591_v49 = vadd.f32 %v1205_v57, %v916_v44 }
 0x1ca   : > { %v1215_v7 = vpop.f32.mrf.mxu0  ;;  %v4943_v12 = vpop.f32.mrf.mxu1  ;;  %5382 = vmatmul.mubr.msk.f32.vlgmr.msra.gmra.mxu1 %vm590_vm2, %v6103_v46 }
 0x1cb   : > { %v6595_v20 = vadd.f32 %v5001_v60, %v4943_v12  ;;  %5384 = vmatprep.mubr.msk.f32.mxu1 %vm590_vm2, %v6110_v17 }
 0x1cc   : > { %v5004_v26 = vpop.f32.mrf.mxu0  ;;  %v926_v56 = vpop.f32.mrf.mxu1 }
 0x1cd   : > { %v6599_v62 = vadd.f32 %v1215_v7, %v926_v56 }
 0x1ce   : > { %v1225_v37 = vpop.f32.mrf.mxu0  ;;  %v4946_v14 = vpop.f32.mrf.mxu1  ;;  %5385 = vmatmul.mubr.msk.f32.gmra.mxu1 %vm590_vm2, %v6121_v58 }
 0x1cf   : > { %v6603_v42 = vadd.f32 %v5004_v26, %v4946_v14  ;;  %5387 = vmatprep.mubr.msk.f32.mxu1 %vm590_vm2, %v6128_v29 }
 0x1d0   : > { %v5007_v46 = vpop.f32.mrf.mxu0  ;;  %v936_v50 = vpop.f32.mrf.mxu1 }
 0x1d1   : > { %v6607_v61 = vadd.f32 %v1225_v37, %v936_v50 }
 0x1d2   : > { %v1235_v3 = vpop.f32.mrf.mxu0  ;;  %v4949_v17 = vpop.f32.mrf.mxu1  ;;  %5388 = vmatmul.mubr.msk.f32.gmra.mxu1 %vm590_vm2, %v6139_v30 }
 0x1d3   : > { %v6611_v24 = vadd.f32 %v5007_v46, %v4949_v17  ;;  %5390 = vmatprep.mubr.msk.f32.mxu1 %vm590_vm2, %v6146_v2 }
 0x1d4   : > { %v5010_v58 = vpop.f32.mrf.mxu0  ;;  %v946_v0 = vpop.f32.mrf.mxu1 }
 0x1d5   : > { %v6615_v33 = vadd.f32 %v1235_v3, %v946_v0 }
 0x1d6   : > { %v1245_v34 = vpop.f32.mrf.mxu0  ;;  %v4952_v29 = vpop.f32.mrf.mxu1  ;;  %5391 = vmatmul.mubr.msk.f32.gmra.mxu1 %vm590_vm2, %v6157_v10 }
 0x1d7   : > { %v6619_v9 = vadd.f32 %v5010_v58, %v4952_v29  ;;  %5393 = vmatprep.mubr.msk.f32.mxu1 %vm590_vm2, %v6164_v27 }
 0x1d8   : > { %v5013_v30 = vpop.f32.mrf.mxu0  ;;  %v956_v39 = vpop.f32.mrf.mxu1 }
 0x1d9   : > { %v6623_v41 = vadd.f32 %v1245_v34, %v956_v39 }
 0x1da   : > { %v1255_v32 = vpop.f32.mrf.mxu0  ;;  %v4955_v2 = vpop.f32.mrf.mxu1  ;;  %5394 = vmatmul.mubr.msk.f32.gmra.mxu1 %vm590_vm2, %v6175_v40 }
 0x1db   : > { %v6627_v57 = vadd.f32 %v5013_v30, %v4955_v2  ;;  %5396 = vmatprep.mubr.msk.f32.mxu1 %vm590_vm2, %v6182_v51 }
 0x1dc   : > { %v5016_v10 = vpop.f32.mrf.mxu0  ;;  %v966_v23 = vpop.f32.mrf.mxu1 }
 0x1dd   : > { %v6631_v60 = vadd.f32 %v1255_v32, %v966_v23 }
 0x1de   : > { %v1265_v44 = vpop.f32.mrf.mxu0  ;;  %v4958_v27 = vpop.f32.mrf.mxu1  ;;  %5397 = vmatmul.mubr.msk.f32.gmra.mxu1 %vm590_vm2, %v6193_v1 }
 0x1df   : > { %v6635_v7 = vadd.f32 %v5016_v10, %v4958_v27  ;;  %5399 = vmatprep.mubr.msk.f32.mxu1 %vm590_vm2, %v6200_v38 }
 0x1e0   : > { %v5093_v40 = vpop.f32.mrf.mxu0  ;;  %v976_v12 = vpop.f32.mrf.mxu1 }
 0x1e1   : > { %v6639_v26 = vadd.f32 %v1265_v44, %v976_v12 }
 0x1e2   : > { %v1813_v56 = vpop.f32.mrf.mxu0  ;;  %v5035_v51 = vpop.f32.mrf.mxu1  ;;  %5400 = vmatmul.mubr.msk.f32.gmra.mxu1 %vm590_vm2, %v6208_v22 }
 0x1e3   : > { %v1600_v37 = vadd.f32 %v5035_v51, %v6509_v19  ;;  %5402 = vmatprep.mubr.msk.f32.mxu1 %vm590_vm2, %v6212_v16 }
 0x1e4   : > { %v5096_v1 = vpop.f32.mrf.mxu0  ;;  %v1460_v14 = vpop.f32.mrf.mxu1 }
 0x1e5   : > { %v1599_v46 = vadd.f32 %v1460_v14, %v6515_v36  ;;  %v6647_v50 = vadd.f32 %v5093_v40, %v1600_v37  ;;  %v3418_v37 = vld [vmem:[#allocation2 + $0xf2] sm:$0xff] }
 0x1e6   : > { %v1823_v38 = vpop.f32.mrf.mxu0  ;;  %v5038_v3 = vpop.f32.mrf.mxu1  ;;  %5403 = vmatmul.mubr.msk.f32.gmra.mxu1 %vm590_vm2, %v6220_v21 }
 0x1e7   : > { %v1602_v17 = vadd.f32 %v5038_v3, %v6521_v53  ;;  %5405 = vmatprep.mubr.msk.f32.mxu1 %vm590_vm2, %v6224_v25  ;;  %v6654_v22 = vadd.f32 %v1813_v56, %v1599_v46 }
 0x1e8   : > { %v5099_v19 = vpop.f32.mrf.mxu0  ;;  %v1470_v16 = vpop.f32.mrf.mxu1 }
 0x1e9   : > { %v1601_v58 = vadd.f32 %v1470_v16, %v6527_v5  ;;  %v6657_v0 = vadd.f32 %v5096_v1, %v1602_v17 }
 0x1ea   : > { %v1833_v36 = vpop.f32.mrf.mxu0  ;;  %v5041_v34 = vpop.f32.mrf.mxu1  ;;  %5406 = vmatmul.mubr.msk.f32.gmra.mxu1 %vm590_vm2, %v6232_v31 }
 0x1eb   : > { %v1604_v21 = vadd.f32 %v5041_v34, %v6533_v13  ;;  %5408 = vmatprep.mubr.msk.f32.mxu1 %vm590_vm2, %v6236_v52  ;;  %v6664_v53 = vadd.f32 %v1823_v38, %v1601_v58  ;;  %v7567_v38 = vld [vmem:[#allocation14_spill] sm:$0xff] }
 0x1ec   : > { %v5102_v25 = vpop.f32.mrf.mxu0  ;;  %v1480_v29 = vpop.f32.mrf.mxu1 }
 0x1ed   : > { %v1603_v30 = vadd.f32 %v1480_v29, %v6539_v11  ;;  %v6667_v39 = vadd.f32 %v5099_v19, %v1604_v21 }
 0x1ee   : > { %v1843_v5 = vpop.f32.mrf.mxu0  ;;  %v5044_v32 = vpop.f32.mrf.mxu1  ;;  %5409 = vmatmul.mubr.msk.f32.gmra.mxu1 %vm590_vm2, %v6244_v43 }
 0x1ef   : > { %v1606_v31 = vadd.f32 %v5044_v32, %v6545_v59  ;;  %5411 = vmatprep.mubr.msk.f32.mxu1 %vm590_vm2, %v6248_v48  ;;  %v6674_v13 = vadd.f32 %v1833_v36, %v1603_v30 }
 0x1f0   : > { %v5105_v52 = vpop.f32.mrf.mxu0  ;;  %v1490_v2 = vpop.f32.mrf.mxu1 }
 0x1f1   : > { %v1605_v10 = vadd.f32 %v1490_v2, %v6551_v8  ;;  %v6677_v23 = vadd.f32 %v5102_v25, %v1606_v31 }
 0x1f2   : > { %v1853_v11 = vpop.f32.mrf.mxu0  ;;  %v5047_v44 = vpop.f32.mrf.mxu1  ;;  %5412 = vmatmul.mubr.msk.f32.gmra.mxu1 %vm590_vm2, %v6256_v4 }
 0x1f3   : > { %v1608_v43 = vadd.f32 %v5047_v44, %v6557_v18  ;;  %5414 = vmatprep.mubr.msk.f32.mxu1 %vm590_vm2, %v6264_v55  ;;  %v6684_v59 = vadd.f32 %v1843_v5, %v1605_v10 }
 0x1f4   : > { %v5108_v48 = vpop.f32.mrf.mxu0  ;;  %v1500_v27 = vpop.f32.mrf.mxu1 }
 0x1f5   : > { %v1607_v40 = vadd.f32 %v1500_v27, %v6563_v35  ;;  %v6687_v12 = vadd.f32 %v5105_v52, %v1608_v43 }
 0x1f6   : > { %v1863_v8 = vpop.f32.mrf.mxu0  ;;  %v5050_v56 = vpop.f32.mrf.mxu1  ;;  %5415 = vmatmul.mubr.msk.f32.gmra.mxu1 %vm590_vm2, %v6272_v63 }
 0x1f7   : > { %v1610_v4 = vadd.f32 %v5050_v56, %v6569_v54  ;;  %5417 = vmatprep.mubr.msk.f32.mxu1 %vm590_vm2, %v6417_v45  ;;  %v6694_v18 = vadd.f32 %v1853_v11, %v1607_v40  ;;  %v3419_v54 = vld [vmem:[#allocation2 + $0xfa] sm:$0xff] }
 0x1f8   : > { %v5111_v55 = vpop.f32.mrf.mxu0  ;;  %v1510_v51 = vpop.f32.mrf.mxu1 }
 0x1f9   : > { %v1609_v1 = vadd.f32 %v1510_v51, %v6575_v28  ;;  %v6697_v35 = vadd.f32 %v5108_v48, %v1610_v4 }
 0x1fa   : > { %v1873_v14 = vpop.f32.mrf.mxu0  ;;  %v5053_v46 = vpop.f32.mrf.mxu1  ;;  %5418 = vmatmul.mubr.msk.f32.gmra.mxu1 %vm590_vm2, %v7567_v38 }
 0x1fb   : > { %v1612_v63 = vadd.f32 %v5053_v46, %v6580_v47  ;;  %5420 = vmatprep.mubr.msk.f32.mxu1 %vm590_vm2, %v3418_v37  ;;  %v6703_v45 = vadd.f32 %v1863_v8, %v1609_v1 }
 0x1fc   : > { %v5114_v3 = vpop.f32.mrf.mxu0  ;;  %v1520_v17 = vpop.f32.mrf.mxu1 }
 0x1fd   : > { %v1611_v19 = vadd.f32 %v1520_v17, %v6584_v15  ;;  %v6706_v16 = vadd.f32 %v5111_v55, %v1612_v63 }
 0x1fe   : > { %v1883_v28 = vpop.f32.mrf.mxu0  ;;  %v5056_v58 = vpop.f32.mrf.mxu1  ;;  %5421 = vmatmul.mubr.msk.f32.gmra.mxu1 %vm590_vm2, %v3419_v54 }
 0x1ff   : > { %v1614_v36 = vadd.f32 %v5056_v58, %v6587_v6  ;;  %v6710_v34 = vadd.f32 %v1873_v14, %v1611_v19 }
 0x200   : > { %v5117_v47 = vpop.f32.mrf.mxu0  ;;  %v1530_v21 = vpop.f32.mrf.mxu1 }
 0x201   : > { %v1613_v25 = vadd.f32 %v1530_v21, %v6591_v49  ;;  %v6713_v29 = vadd.f32 %v5114_v3, %v1614_v36 }
 0x202   : > { %v1893_v30 = vpop.f32.mrf.mxu0  ;;  %v5059_v5 = vpop.f32.mrf.mxu1 }
 0x203   : > { %v1616_v15 = vadd.f32 %v5059_v5, %v6595_v20  ;;  %v6716_v32 = vadd.f32 %v1883_v28, %v1613_v25 }
 0x204   : > { %v5120_v31 = vpop.f32.mrf.mxu0  ;;  %v1540_v52 = vpop.f32.mrf.mxu1 }
 0x205   : > { %v1615_v2 = vadd.f32 %v1540_v52, %v6599_v62  ;;  %v6719_v10 = vadd.f32 %v5117_v47, %v1616_v15 }
 0x206   : > { %v1903_v6 = vpop.f32.mrf.mxu0  ;;  %v5062_v11 = vpop.f32.mrf.mxu1 }
 0x207   : > { %v1618_v44 = vadd.f32 %v5062_v11, %v6603_v42  ;;  %v6722_v43 = vadd.f32 %v1893_v30, %v1615_v2 }
 0x208   : > { %v5123_v49 = vpop.f32.mrf.mxu0  ;;  %v1550_v48 = vpop.f32.mrf.mxu1 }
 0x209   : > { %v1617_v27 = vadd.f32 %v1550_v48, %v6607_v61  ;;  %v6725_v40 = vadd.f32 %v5120_v31, %v1618_v44 }
 0x20a   : > { %v1913_v20 = vpop.f32.mrf.mxu0  ;;  %v5065_v8 = vpop.f32.mrf.mxu1 }
 0x20b   : > { %v1620_v56 = vadd.f32 %v5065_v8, %v6611_v24  ;;  %v6728_v4 = vadd.f32 %v1903_v6, %v1617_v27 }
 0x20c   : > { %v5126_v62 = vpop.f32.mrf.mxu0  ;;  %v1560_v55 = vpop.f32.mrf.mxu1 }
 0x20d   : > { %v1619_v51 = vadd.f32 %v1560_v55, %v6615_v33  ;;  %v6731_v37 = vadd.f32 %v5123_v49, %v1620_v56 }
 0x20e   : > { %v1923_v42 = vpop.f32.mrf.mxu0  ;;  %v5068_v1 = vpop.f32.mrf.mxu1 }
 0x20f   : > { %v1622_v14 = vadd.f32 %v5068_v1, %v6619_v9  ;;  %v6734_v46 = vadd.f32 %v1913_v20, %v1619_v51 }
 0x210   : > { %v5129_v61 = vpop.f32.mrf.mxu0  ;;  %v1570_v38 = vpop.f32.mrf.mxu1 }
 0x211   : > { %v1621_v63 = vadd.f32 %v1570_v38, %v6623_v41  ;;  %v6737_v54 = vadd.f32 %v5126_v62, %v1622_v14 }
 0x212   : > { %v1933_v24 = vpop.f32.mrf.mxu0  ;;  %v5071_v3 = vpop.f32.mrf.mxu1 }
 0x213   : > { %v1624_v17 = vadd.f32 %v5071_v3, %v6627_v57  ;;  %v6740_v19 = vadd.f32 %v1923_v42, %v1621_v63 }
 0x214   : > { %v5132_v33 = vpop.f32.mrf.mxu0  ;;  %v1580_v28 = vpop.f32.mrf.mxu1 }
 0x215   : > { %v1623_v58 = vadd.f32 %v1580_v28, %v6631_v60  ;;  %v6743_v36 = vadd.f32 %v5129_v61, %v1624_v17 }
 0x216   : > { %v1943_v9 = vpop.f32.mrf.mxu0  ;;  %v5074_v47 = vpop.f32.mrf.mxu1 }
 0x217   : > { %v1626_v21 = vadd.f32 %v5074_v47, %v6635_v7  ;;  %v6746_v25 = vadd.f32 %v1933_v24, %v1623_v58 }
 0x218   : > { %v6748_v41 = vpop.f32.mrf.mxu0  ;;  %v1590_v30 = vpop.f32.mrf.mxu1 }
 0x219   : > { %v1625_v5 = vadd.f32 %v1590_v30, %v6639_v26  ;;  %v6751_v57 = vadd.f32 %v5132_v33, %v1626_v21 }
 0x21a   : > { %v6753_v15 = vpop.f32.mrf.mxu0  ;;  %v5151_v31 = vpop.f32.mrf.mxu1 }
 0x21b   : > { %v6756_v60 = vadd.f32 %v5151_v31, %v6647_v50  ;;  %v6758_v52 = vadd.f32 %v1943_v9, %v1625_v5 }
 0x21c   : > { %v6760_v2 = vpop.f32.mrf.mxu0  ;;  %v2166_v7 = vpop.f32.mrf.mxu1 }
 0x21d   : > { %v6763_v6 = vadd.f32 %v2166_v7, %v6654_v22 }
 0x21e   : > { %v6765_v11 = vpop.f32.mrf.mxu0  ;;  %v5154_v44 = vpop.f32.mrf.mxu1 }
 0x21f   : > { %v6768_v26 = vadd.f32 %v5154_v44, %v6657_v0 }
 0x220   : > { %v6770_v49 = vpop.f32.mrf.mxu0  ;;  %v2176_v48 = vpop.f32.mrf.mxu1 }
 0x221   : > { %v6773_v50 = vadd.f32 %v2176_v48, %v6664_v53 }
 0x222   : > { %v6775_v27 = vpop.f32.mrf.mxu0  ;;  %v5157_v20 = vpop.f32.mrf.mxu1 }
 0x223   : > { %v6778_v8 = vadd.f32 %v5157_v20, %v6667_v39 }
 0x224   : > { %v6780_v22 = vpop.f32.mrf.mxu0  ;;  %v2186_v56 = vpop.f32.mrf.mxu1 }
 0x225   : > { %v6783_v62 = vadd.f32 %v2186_v56, %v6674_v13 }
 0x226   : > { %v6785_v0 = vpop.f32.mrf.mxu0  ;;  %v5160_v55 = vpop.f32.mrf.mxu1 }
 0x227   : > { %v6788_v51 = vadd.f32 %v5160_v55, %v6677_v23 }
 0x228   : > { %v6790_v53 = vpop.f32.mrf.mxu0  ;;  %v2196_v42 = vpop.f32.mrf.mxu1 }
 0x229   : > { %v6793_v1 = vadd.f32 %v2196_v42, %v6684_v59 }
 0x22a   : > { %v6795_v39 = vpop.f32.mrf.mxu0  ;;  %v5163_v14 = vpop.f32.mrf.mxu1 }
 0x22b   : > { %v6798_v61 = vadd.f32 %v5163_v14, %v6687_v12 }
 0x22c   : > { %v6800_v13 = vpop.f32.mrf.mxu0  ;;  %v2206_v38 = vpop.f32.mrf.mxu1 }
 0x22d   : > { %v6803_v63 = vadd.f32 %v2206_v38, %v6694_v18 }
 0x22e   : > { %v6805_v23 = vpop.f32.mrf.mxu0  ;;  %v5166_v24 = vpop.f32.mrf.mxu1 }
 0x22f   : > { %v6808_v3 = vadd.f32 %v5166_v24, %v6697_v35 }
 0x230   : > { %v6810_v59 = vpop.f32.mrf.mxu0  ;;  %v2216_v17 = vpop.f32.mrf.mxu1 }
 0x231   : > { %v6813_v33 = vadd.f32 %v2216_v17, %v6703_v45 }
 0x232   : > { %v6815_v12 = vpop.f32.mrf.mxu0  ;;  %v5169_v28 = vpop.f32.mrf.mxu1 }
 0x233   : > { %v6818_v58 = vadd.f32 %v5169_v28, %v6706_v16 }
 0x234   : > { %v6820_v18 = vpop.f32.mrf.mxu0  ;;  %v2226_v9 = vpop.f32.mrf.mxu1 }
 0x235   : > { %7568 = vst [vmem:[#allocation3_spill] sm:$0xff] %v6820_v18  ;;  %v6823_v47 = vadd.f32 %v2226_v9, %v6710_v34 }
 0x236   : > { %v6825_v35 = vpop.f32.mrf.mxu0  ;;  %v5172_v21 = vpop.f32.mrf.mxu1 }
 0x237   : > { %7569 = vst [vmem:[#allocation4_spill] sm:$0xff] %v6825_v35  ;;  %v6828_v30 = vadd.f32 %v5172_v21, %v6713_v29 }
 0x238   : > { %v6830_v45 = vpop.f32.mrf.mxu0  ;;  %v2236_v5 = vpop.f32.mrf.mxu1 }
 0x239   : > { %7570 = vst [vmem:[#allocation5_spill] sm:$0xff] %v6830_v45  ;;  %v6833_v31 = vadd.f32 %v2236_v5, %v6716_v32 }
 0x23a   : > { %v6835_v16 = vpop.f32.mrf.mxu0  ;;  %v5175_v7 = vpop.f32.mrf.mxu1 }
 0x23b   : > { %7571 = vst [vmem:[#allocation6_spill] sm:$0xff] %v6833_v31  ;;  %7572 = vst [vmem:[#allocation7_spill] sm:$0xff] %v6835_v16  ;;  %v6838_v44 = vadd.f32 %v5175_v7, %v6719_v10 }
 0x23c   : > { %v6840_v34 = vpop.f32.mrf.mxu0  ;;  %v2246_v48 = vpop.f32.mrf.mxu1 }
 0x23d   : > { %7573 = vst [vmem:[#allocation8_spill] sm:$0xff] %v6838_v44  ;;  %7574 = vst [vmem:[#allocation9_spill] sm:$0xff] %v6840_v34  ;;  %v6843_v20 = vadd.f32 %v2246_v48, %v6722_v43 }
 0x23e   : > { %v6845_v29 = vpop.f32.mrf.mxu0  ;;  %v5178_v56 = vpop.f32.mrf.mxu1 }
 0x23f   : > { %7575 = vst [vmem:[#allocation10_spill] sm:$0xff] %v6843_v20  ;;  %7576 = vst [vmem:[#allocation11_spill] sm:$0xff] %v6845_v29  ;;  %v6848_v55 = vadd.f32 %v5178_v56, %v6725_v40 }
 0x240   : > { %v6850_v32 = vpop.f32.mrf.mxu0  ;;  %v2256_v42 = vpop.f32.mrf.mxu1 }
 0x241   : > { %7577 = vst [vmem:[#allocation12_spill] sm:$0xff] %v6848_v55  ;;  %7578 = vst [vmem:[#allocation13_spill] sm:$0xff] %v6850_v32  ;;  %v6853_v14 = vadd.f32 %v2256_v42, %v6728_v4 }
 0x242   : > { %v6855_v10 = vpop.f32.mrf.mxu0  ;;  %v5181_v38 = vpop.f32.mrf.mxu1 }
 0x243   : > { %7579 = vst [vmem:[#allocation14_spill] sm:$0xff] %v6853_v14  ;;  %7580 = vst [vmem:[#allocation15_spill] sm:$0xff] %v6855_v10  ;;  %v6858_v24 = vadd.f32 %v5181_v38, %v6731_v37 }
 0x244   : > { %v6860_v43 = vpop.f32.mrf.mxu0  ;;  %v2266_v17 = vpop.f32.mrf.mxu1 }
 0x245   : > { %7581 = vst [vmem:[#allocation16_spill] sm:$0xff] %v6858_v24  ;;  %7582 = vst [vmem:[#allocation17_spill] sm:$0xff] %v6860_v43  ;;  %v6863_v28 = vadd.f32 %v2266_v17, %v6734_v46 }
 0x246   : > { %v6865_v40 = vpop.f32.mrf.mxu0  ;;  %v5184_v9 = vpop.f32.mrf.mxu1 }
 0x247   : > { %7583 = vst [vmem:[#allocation18_spill] sm:$0xff] %v6863_v28  ;;  %7584 = vst [vmem:[#allocation19_spill] sm:$0xff] %v6865_v40  ;;  %v6868_v21 = vadd.f32 %v5184_v9, %v6737_v54 }
 0x248   : > { %v6870_v4 = vpop.f32.mrf.mxu0  ;;  %v2276_v5 = vpop.f32.mrf.mxu1 }
 0x249   : > { %7585 = vst [vmem:[#allocation20_spill] sm:$0xff] %v6868_v21  ;;  %7586 = vst [vmem:[#allocation21_spill] sm:$0xff] %v6870_v4  ;;  %v6873_v7 = vadd.f32 %v2276_v5, %v6740_v19 }
 0x24a   : > { %v6875_v37 = vpop.f32.mrf.mxu0  ;;  %v5187_v48 = vpop.f32.mrf.mxu1 }
 0x24b   : > { %7587 = vst [vmem:[#allocation22_spill] sm:$0xff] %v6873_v7  ;;  %7588 = vst [vmem:[#allocation23_spill] sm:$0xff] %v6875_v37  ;;  %v6878_v56 = vadd.f32 %v5187_v48, %v6743_v36 }
 0x24c   : > { %v6880_v46 = vpop.f32.mrf.mxu0  ;;  %v2286_v42 = vpop.f32.mrf.mxu1 }
 0x24d   : > { %7589 = vst [vmem:[#allocation24_spill] sm:$0xff] %v6878_v56  ;;  %7590 = vst [vmem:[#allocation25_spill] sm:$0xff] %v6880_v46  ;;  %v6883_v38 = vadd.f32 %v2286_v42, %v6746_v25 }
 0x24e   : > { %v6885_v54 = vpop.f32.mrf.mxu0  ;;  %v5190_v17 = vpop.f32.mrf.mxu1 }
 0x24f   : > { %7591 = vst [vmem:[#allocation26_spill] sm:$0xff] %v6883_v38  ;;  %7592 = vst [vmem:[#allocation27_spill] sm:$0xff] %v6885_v54  ;;  %v6888_v9 = vadd.f32 %v5190_v17, %v6751_v57 }
 0x250   : > { %v2296_v19 = vpop.f32.mrf.mxu1  ;;  %v5325_v37 = vpop.f32.mrf.mxu0 }
 0x251   : > { %7593 = vst [vmem:[#allocation28_spill] sm:$0xff] %v6888_v9  ;;  %v6891_v5 = vadd.f32 %v2296_v19, %v6758_v52 }
 0x252   : > { %v5267_v4 = vpop.f32.mrf.mxu1  ;;  %v3225_v48 = vpop.f32.mrf.mxu0 }
 0x253   : > { %7594 = vst [vmem:[#allocation29_spill] sm:$0xff] %v6891_v5 }
 0x254   : > { %v2872_v36 = vpop.f32.mrf.mxu1  ;;  %v5328_v40 = vpop.f32.mrf.mxu0 }
 0x256   : > { %v5270_v56 = vpop.f32.mrf.mxu1  ;;  %v3235_v42 = vpop.f32.mrf.mxu0 }
 0x258   : > { %v2882_v46 = vpop.f32.mrf.mxu1  ;;  %v5331_v43 = vpop.f32.mrf.mxu0 }
 0x25a   : > { %v5273_v7 = vpop.f32.mrf.mxu1  ;;  %v6899_v52 = vpop.f32.mrf.mxu0 }
 0x25c   : > { %v2892_v25 = vpop.f32.mrf.mxu1  ;;  %v6905_v9 = vpop.f32.mrf.mxu0 }
 0x25e   : > { %v5276_v38 = vpop.f32.mrf.mxu1  ;;  %v6911_v28 = vpop.f32.mrf.mxu0 }
 0x260   : > { %v6893_v54 = vpop.f32.mrf.mxu1  ;;  %v6917_v29 = vpop.f32.mrf.mxu0 }
 0x262   : > { %v6895_v57 = vpop.f32.mrf.mxu1  ;;  %v6923_v55 = vpop.f32.mrf.mxu0 }
 0x264   : > { %v6897_v17 = vpop.f32.mrf.mxu1  ;;  %v6929_v45 = vpop.f32.mrf.mxu0 }
 0x266   : > { %v6901_v19 = vpop.f32.mrf.mxu1  ;;  %v6935_v31 = vpop.f32.mrf.mxu0 }
 0x267   : > { %7603 = vst [vmem:[#allocation38_spill] sm:$0xff] %v6935_v31 }
 0x268   : > { %v6903_v5 = vpop.f32.mrf.mxu1 }
 0x26a   : > { %v6907_v21 = vpop.f32.mrf.mxu1 }
 0x26c   : > { %v6909_v10 = vpop.f32.mrf.mxu1 }
 0x26e   : > { %v6913_v32 = vpop.f32.mrf.mxu1 }
 0x26f   : > { %7595 = vst [vmem:[#allocation30_spill] sm:$0xff] %v6913_v32 }
 0x270   : > { %v6915_v24 = vpop.f32.mrf.mxu1 }
 0x271   : > { %7596 = vst [vmem:[#allocation31_spill] sm:$0xff] %v6915_v24 }
 0x272   : > { %v6919_v14 = vpop.f32.mrf.mxu1 }
 0x273   : > { %7597 = vst [vmem:[#allocation32_spill] sm:$0xff] %v6919_v14  ;;  %v6941_v14 = vpop.f32.mrf.mxu0 }
 0x274   : > { %v6921_v34 = vpop.f32.mrf.mxu1  ;;  %7606 = vst [vmem:[#allocation41_spill] sm:$0xff] %v6941_v14 }
 0x275   : > { %7598 = vst [vmem:[#allocation33_spill] sm:$0xff] %v6921_v34 }
 0x276   : > { %v6925_v16 = vpop.f32.mrf.mxu1 }
 0x277   : > { %7599 = vst [vmem:[#allocation34_spill] sm:$0xff] %v6925_v16  ;;  %v2659_v16 = vadd.f32 %v6748_v41, %v6756_v60  ;;  %v2660_v41 = vadd.f32 %v6765_v11, %v6773_v50 }
 0x278   : > { %v6927_v20 = vpop.f32.mrf.mxu1 }
 0x279   : > { %7600 = vst [vmem:[#allocation35_spill] sm:$0xff] %v6927_v20  ;;  %v3012_v18 = vadd.f32 %v5267_v4, %v2659_v16  ;;  %v2663_v16 = vadd.f32 %v6770_v49, %v6778_v8 }
 0x27a   : > { %v6931_v44 = vpop.f32.mrf.mxu1 }
 0x27b   : > { %7601 = vst [vmem:[#allocation36_spill] sm:$0xff] %v6931_v44  ;;  %v2658_v44 = vadd.f32 %v6753_v15, %v6763_v6  ;;  %v3365_v60 = vadd.f32 %v5325_v37, %v3012_v18  ;;  %v6968_v6 = vld [vmem:[%s7527_s4] ss:$0 sm:$0xff]  ;;  %v2665_v37 = vadd.f32 %v6780_v22, %v6788_v51 }
 0x27c   : > { %v6933_v35 = vpop.f32.mrf.mxu1 }
 0x27d   : > { %7602 = vst [vmem:[#allocation37_spill] sm:$0xff] %v6933_v35  ;;  %v6951_v35 = vpop.f32.mrf.mxu0 }
 0x27e   : > { %v6937_v24 = vpop.f32.mrf.mxu1 }
 0x27f   : > { %7604 = vst [vmem:[#allocation39_spill] sm:$0xff] %v6937_v24  ;;  %v3011_v24 = vadd.f32 %v2872_v36, %v2658_v44  ;;  %v6963_v4 = vpop.f32.mrf.mxu0  ;;  %v3013_v44 = vadd.f32 %v2882_v46, %v2660_v41  ;;  %v3016_v36 = vadd.f32 %v5273_v7, %v2663_v16 }
 0x280   : > { %v6939_v32 = vpop.f32.mrf.mxu1 }
 0x281   : > { %7605 = vst [vmem:[#allocation40_spill] sm:$0xff] %v6939_v32  ;;  %v2661_v32 = vadd.f32 %v6760_v2, %v6768_v26  ;;  %v3364_v26 = vadd.f32 %v3225_v48, %v3011_v24  ;;  %v3366_v7 = vadd.f32 %v3235_v42, %v3013_v44  ;;  %v3369_v48 = vadd.f32 %v5331_v43, %v3016_v36 }
 0x282   : > { %v6943_v34 = vpop.f32.mrf.mxu1  ;;  %v2666_v44 = vadd.f32 %v6795_v39, %v6803_v63  ;;  %v2669_v39 = vadd.f32 %v6800_v13, %v6808_v3 }
 0x283   : > { %7607 = vst [vmem:[#allocation42_spill] sm:$0xff] %v6943_v34  ;;  %v3014_v34 = vadd.f32 %v5270_v56, %v2661_v32  ;;  %v2662_v32 = vadd.f32 %v6775_v27, %v6783_v62  ;;  %v6977_v56 = vpop.f32.mrf.mxu0  ;;  %v3018_v62 = vadd.f32 %v5276_v38, %v2665_v37 }
 0x284   : > { %v6947_v20 = vpop.f32.mrf.mxu1  ;;  %v3019_v36 = vadd.f32 %v6897_v17, %v2666_v44  ;;  %v7610_v44 = vld [vmem:[#allocation38_spill] sm:$0xff] }
 0x285   : > { %v3367_v18 = vadd.f32 %v5328_v40, %v3014_v34  ;;  %v3015_v8 = vadd.f32 %v2892_v25, %v2662_v32  ;;  %v2664_v34 = vadd.f32 %v6785_v0, %v6793_v1  ;;  %v6994_v42 = vpop.f32.mrf.mxu0 }
 0x286   : > { %v6953_v31 = vpop.f32.mrf.mxu1 }
 0x287   : > { %v3368_v0 = vadd.f32 %v6899_v52, %v3015_v8  ;;  %v3017_v1 = vadd.f32 %v6893_v54, %v2664_v34  ;;  %v7019_v63 = vpop.f32.mrf.mxu0  ;;  %v2668_v8 = vadd.f32 %v6805_v23, %v6813_v33  ;;  %v3372_v33 = vadd.f32 %v6923_v55, %v3019_v36 }
 0x288   : > { %v6957_v14 = vpop.f32.mrf.mxu1 }
 0x289   : > { %7608 = vst [vmem:[#allocation43_spill] sm:$0xff] %v6957_v14 }
 0x28a   : > { %v5383_v15 = vpop.f32.mrf.mxu1 }
 0x28b   : > { %v3718_v2 = vadd.f32 %v5383_v15, %v3365_v60 }
 0x28c   : > { %v3578_v11 = vpop.f32.mrf.mxu1 }
 0x28d   : > { %v3717_v50 = vadd.f32 %v3578_v11, %v3364_v26  ;;  %v6973_v49 = vadd.f32 %v6968_v6, %v3718_v2 }
 0x28e   : > { %v5386_v14 = vpop.f32.mrf.mxu1 }
 0x28f   : > { %v6980_v46 = vadd.f32 %v6968_v6, %v3717_v50  ;;  %v3720_v24 = vadd.f32 %v5386_v14, %v3367_v18  ;;  %v3781_v27 = vmax.f32 %v6973_v49, 0.0  ;;  %v2667_v14 = vadd.f32 %v6790_v53, %v6798_v61 }
 0x290   : > { %v3588_v40 = vpop.f32.mrf.mxu1  ;;  %v3371_v61 = vadd.f32 %v6905_v9, %v3018_v62  ;;  %v3370_v50 = vadd.f32 %v6911_v28, %v3017_v1  ;;  %v3022_v18 = vadd.f32 %v6901_v19, %v2669_v39  ;;  %v2671_v19 = vadd.f32 %v6810_v59, %v6818_v58  ;;  %v7039_v62 = vpop.f32.mrf.mxu0  ;;  %v7614_v39 = vld [vmem:[#allocation41_spill] sm:$0xff] }
 0x291   : > { %v3719_v25 = vadd.f32 %v3588_v40, %v3366_v7  ;;  %v3811_v22 = vsel %vm590_vm2, %v3781_v27, -inf  ;;  %v6989_v51 = vadd.f32 %v6968_v6, %v3720_v24  ;;  %v3780_v41 = vmax.f32 %v6980_v46, 0.0 }
 0x292   : > { %v5389_v38 = vpop.f32.mrf.mxu1  ;;  %3812 = vmax.xlane.f32.xlu0 %v3811_v22  ;;  %v3020_v15 = vadd.f32 %v6895_v57, %v2667_v14  ;;  %v2670_v59 = vadd.f32 %v6815_v12, %v6823_v47  ;;  %v3375_v22 = vadd.f32 %v6929_v45, %v3022_v18  ;;  %v7609_v12 = vld [vmem:[#allocation3_spill] sm:$0xff]  ;;  %v7064_v1 = vpop.f32.mrf.mxu0 }
 0x293   : > { %v6999_v43 = vadd.f32 %v6968_v6, %v3719_v25  ;;  %v3722_v60 = vadd.f32 %v5389_v38, %v3369_v48  ;;  %v3783_v16 = vmax.f32 %v6989_v51, 0.0  ;;  %v3808_v52 = vsel %vm590_vm2, %v3780_v41, -inf }
 0x294   : > { %v3598_v53 = vpop.f32.mrf.mxu1  ;;  %v3373_v37 = vadd.f32 %v6917_v29, %v3020_v15  ;;  %v3021_v29 = vadd.f32 %v6903_v5, %v2668_v8  ;;  %v3024_v25 = vadd.f32 %v6907_v21, %v2671_v19  ;;  %v3023_v21 = vadd.f32 %v6909_v10, %v2670_v59  ;;  %v7612_v10 = vld [vmem:[#allocation6_spill] sm:$0xff]  ;;  %v7087_v19 = vpop.f32.mrf.mxu0 }
 0x295   : > { %v7010_v54 = vadd.f32 %v6968_v6, %v3722_v60  ;;  %v3721_v2 = vadd.f32 %v3598_v53, %v3368_v0  ;;  %v3817_v26 = vsel %vm590_vm2, %v3783_v16, -inf  ;;  %v3782_v57 = vmax.f32 %v6999_v43, 0.0 }
 0x296   : > { %v5392_v9 = vpop.f32.mrf.mxu1  ;;  %3818 = vmax.xlane.f32.xlu1 %v3817_v26  ;;  %3809 = vmax.xlane.f32.xlu0 %v3808_v52  ;;  %v2673_v47 = vadd.f32 %v7609_v12, %v6828_v30  ;;  %v3374_v53 = vadd.f32 %v7610_v44, %v3021_v29  ;;  %v7611_v52 = vld [vmem:[#allocation30_spill] sm:$0xff]  ;;  %v7613_v26 = vld [vmem:[#allocation4_spill] sm:$0xff]  ;;  %v7617_v29 = vld [vmem:[#allocation31_spill] sm:$0xff] }
 0x297   : > { %v7022_v32 = vadd.f32 %v6968_v6, %v3721_v2  ;;  %v3724_v11 = vadd.f32 %v5392_v9, %v3371_v61  ;;  %v3814_v13 = vsel %vm590_vm2, %v3782_v57, -inf  ;;  %v3785_v28 = vmax.f32 %v7010_v54, 0.0 }
 0x298   : > { %v3608_v17 = vpop.f32.mrf.mxu1  ;;  %v3026_v2 = vadd.f32 %v7611_v52, %v2673_v47  ;;  %v2672_v36 = vadd.f32 %v7613_v26, %v7612_v10  ;;  %v3377_v9 = vadd.f32 %v7614_v39, %v3024_v25  ;;  %v7622_v10 = vld [vmem:[#allocation12_spill] sm:$0xff]  ;;  %v7623_v26 = vld [vmem:[#allocation9_spill] sm:$0xff] }
 0x299   : > { %v7033_v3 = vadd.f32 %v6968_v6, %v3724_v11  ;;  %v3723_v24 = vadd.f32 %v3608_v17, %v3370_v50  ;;  %v3784_v7 = vmax.f32 %v7022_v32, 0.0  ;;  %v3823_v38 = vsel %vm590_vm2, %v3785_v28, -inf }
 0x29a   : > { %v5395_v23 = vpop.f32.mrf.mxu1  ;;  %3815 = vmax.xlane.f32.xlu1 %v3814_v13  ;;  %v7616_v13 = vld [vmem:[#allocation5_spill] sm:$0xff] }
 0x29b   : > { %v7044_v34 = vadd.f32 %v6968_v6, %v3723_v24  ;;  %v3726_v40 = vadd.f32 %v5395_v23, %v3373_v37  ;;  %v3820_v48 = vsel %vm590_vm2, %v3784_v7, -inf  ;;  %v3787_v55 = vmax.f32 %v7033_v3, 0.0  ;;  %v7615_v37 = vld [vmem:[#allocation8_spill] sm:$0xff] }
 0x29c   : > { %v3618_v58 = vpop.f32.mrf.mxu1  ;;  %3821 = vmax.xlane.f32.xlu0 %v3820_v48  ;;  %v2675_v24 = vadd.f32 %v7616_v13, %v7615_v37  ;;  %v7625_v13 = vld [vmem:[#allocation14_spill] sm:$0xff] }
 0x29d   : > { %v7055_v5 = vadd.f32 %v6968_v6, %v3726_v40  ;;  %v3725_v14 = vadd.f32 %v3618_v58, %v3372_v33  ;;  %v3786_v0 = vmax.f32 %v7044_v34, 0.0  ;;  %v3829_v11 = vsel %vm590_vm2, %v3787_v55, -inf  ;;  %v7618_v58 = vld [vmem:[#allocation32_spill] sm:$0xff] }
 0x29e   : > { %v5398_v45 = vpop.f32.mrf.mxu1  ;;  %3824 = vmax.xlane.f32.xlu1 %v3823_v38  ;;  %v3376_v33 = vadd.f32 %v6951_v35, %v3023_v21  ;;  %v3025_v40 = vadd.f32 %v7617_v29, %v2672_v36  ;;  %v7620_v38 = vld [vmem:[#allocation7_spill] sm:$0xff]  ;;  %v2677_v36 = vadd.f32 %v7623_v26, %v7622_v10  ;;  %v7630_v26 = vld [vmem:[#allocation36_spill] sm:$0xff] }
 0x29f   : > { %v7067_v60 = vadd.f32 %v6968_v6, %v3725_v14  ;;  %v3728_v15 = vadd.f32 %v5398_v45, %v3375_v22  ;;  %v3826_v61 = vsel %vm590_vm2, %v3786_v0, -inf  ;;  %v3789_v17 = vmax.f32 %v7055_v5, 0.0  ;;  %v7619_v14 = vld [vmem:[#allocation10_spill] sm:$0xff] }
 0x2a0   : > { %v3628_v30 = vpop.f32.mrf.mxu1  ;;  %3827 = vmax.xlane.f32.xlu0 %v3826_v61  ;;  %v3028_v22 = vadd.f32 %v7618_v58, %v2675_v24  ;;  %v2674_v12 = vadd.f32 %v7620_v38, %v7619_v14  ;;  %v3379_v45 = vadd.f32 %v6963_v4, %v3026_v2  ;;  %v7621_v61 = vld [vmem:[#allocation33_spill] sm:$0xff]  ;;  %v7626_v24 = vld [vmem:[#allocation11_spill] sm:$0xff]  ;;  %v7627_v14 = vld [vmem:[#allocation16_spill] sm:$0xff] }
 0x2a1   : > { %v7081_v50 = vadd.f32 %v6968_v6, %v3728_v15  ;;  %v3727_v18 = vadd.f32 %v3628_v30, %v3374_v53  ;;  %v3788_v8 = vmax.f32 %v7067_v60, 0.0  ;;  %v3835_v44 = vsel %vm590_vm2, %v3789_v17, -inf  ;;  %v3325_v30 = vpop.f32.mrf.mxu0  ;;  %v7628_v38 = vld [vmem:[#allocation13_spill] sm:$0xff] }
 0x2a2   : > { %v5401_v23 = vpop.f32.mrf.mxu1  ;;  %3830 = vmax.xlane.f32.xlu1 %v3829_v11  ;;  %v3027_v52 = vadd.f32 %v7621_v61, %v2674_v12  ;;  %v3381_v29 = vadd.f32 %v6994_v42, %v3028_v22  ;;  %v2679_v12 = vadd.f32 %v7628_v38, %v7627_v14  ;;  %v7629_v22 = vld [vmem:[#allocation35_spill] sm:$0xff]  ;;  %v7635_v14 = vld [vmem:[#allocation17_spill] sm:$0xff] }
 0x2a3   : > { %v7092_v48 = vadd.f32 %v6968_v6, %v3727_v18  ;;  %v3730_v25 = vadd.f32 %v5401_v23, %v3377_v9  ;;  %v3832_v59 = vsel %vm590_vm2, %v3788_v8, -inf  ;;  %v3791_v35 = vmax.f32 %v7081_v50, 0.0  ;;  %v7624_v18 = vld [vmem:[#allocation34_spill] sm:$0xff] }
 0x2a4   : > { %v3638_v47 = vpop.f32.mrf.mxu1  ;;  %3833 = vmax.xlane.f32.xlu0 %v3832_v59  ;;  %v3378_v9 = vadd.f32 %v6977_v56, %v3025_v40  ;;  %v3030_v37 = vadd.f32 %v7624_v18, %v2677_v36  ;;  %v2676_v23 = vadd.f32 %v7626_v24, %v7625_v13  ;;  %v3380_v42 = vadd.f32 %v7019_v63, %v3027_v52 }
 0x2a5   : > { %v7103_v21 = vadd.f32 %v6968_v6, %v3730_v25  ;;  %v3729_v15 = vadd.f32 %v3638_v47, %v3376_v33  ;;  %v3790_v53 = vmax.f32 %v7092_v48, 0.0  ;;  %v3841_v25 = vsel %vm590_vm2, %v3791_v35, -inf  ;;  %v5358_v47 = vpop.f32.mrf.mxu0 }
 0x2a6   : > { %v5404_v39 = vpop.f32.mrf.mxu1  ;;  %3836 = vmax.xlane.f32.xlu1 %v3835_v44  ;;  %v3032_v36 = vadd.f32 %v7630_v26, %v2679_v12  ;;  %v3383_v18 = vadd.f32 %v7039_v62, %v3030_v37  ;;  %v7638_v26 = vld [vmem:[#allocation19_spill] sm:$0xff] }
 0x2a7   : > { %v7113_v4 = vadd.f32 %v6968_v6, %v3729_v15  ;;  %v3732_v2 = vadd.f32 %v5404_v39, %v3379_v45  ;;  %v3838_v11 = vsel %vm590_vm2, %v3790_v53, -inf  ;;  %v3793_v58 = vmax.f32 %v7103_v21, 0.0  ;;  %v7631_v39 = vld [vmem:[#allocation18_spill] sm:$0xff] }
 0x2a8   : > { %v3648_v33 = vpop.f32.mrf.mxu1  ;;  %3839 = vmax.xlane.f32.xlu0 %v3838_v11  ;;  %v3029_v15 = vadd.f32 %v7629_v22, %v2676_v23  ;;  %v7636_v22 = vld [vmem:[#allocation39_spill] sm:$0xff] }
 0x2a9   : > { %v7127_v59 = vadd.f32 %v6968_v6, %v3732_v2  ;;  %v3731_v56 = vadd.f32 %v3648_v33, %v3378_v9  ;;  %v3792_v40 = vmax.f32 %v7113_v4, 0.0  ;;  %v7632_v2 = vld [vmem:[#allocation15_spill] sm:$0xff]  ;;  %v3847_v24 = vsel %vm590_vm2, %v3793_v58, -inf  ;;  %v7633_v33 = vld [vmem:[#allocation37_spill] sm:$0xff] }
 0x2aa   : > { %v5407_v45 = vpop.f32.mrf.mxu1  ;;  %3842 = vmax.xlane.f32.xlu1 %v3841_v25  ;;  %v2678_v9 = vadd.f32 %v7632_v2, %v7631_v39  ;;  %v3335_v25 = vpop.f32.mrf.mxu0 }
 0x2ab   : > { %v7136_v44 = vadd.f32 %v6968_v6, %v3731_v56  ;;  %v3734_v61 = vadd.f32 %v5407_v45, %v3381_v29  ;;  %v3844_v10 = vsel %vm590_vm2, %v3792_v40, -inf  ;;  %v7541_v63 = vmax.f32 %v7127_v59, 0.0  ;;  %v7634_v56 = vld [vmem:[#allocation20_spill] sm:$0xff] }
 0x2ac   : > { %v3658_v11 = vpop.f32.mrf.mxu1  ;;  %3845 = vmax.xlane.f32.xlu0 %v3844_v10  ;;  %v3031_v29 = vadd.f32 %v7633_v33, %v2678_v9  ;;  %v2681_v38 = vadd.f32 %v7635_v14, %v7634_v56  ;;  %v3382_v45 = vadd.f32 %v7064_v1, %v3029_v15  ;;  %v7637_v10 = vld [vmem:[#allocation22_spill] sm:$0xff]  ;;  %v5361_v2 = vpop.f32.mrf.mxu0  ;;  %v7639_v33 = vld [vmem:[#allocation24_spill] sm:$0xff]  ;;  %v7640_v56 = vld [vmem:[#allocation21_spill] sm:$0xff] }
 0x2ad   : > { %v7147_v52 = vadd.f32 %v6968_v6, %v3734_v61  ;;  %v3733_v13 = vadd.f32 %v3658_v11, %v3380_v42  ;;  %v7542_v23 = vmax.f32 %v7136_v44, 0.0  ;;  %v2680_v39 = vadd.f32 %v7638_v26, %v7637_v10  ;;  %v7643_v26 = vld [vmem:[#allocation26_spill] sm:$0xff] }
 0x2ae   : > { %v5410_v12 = vpop.f32.mrf.mxu1  ;;  %3848 = vmax.xlane.f32.xlu1 %v3847_v24  ;;  %v3034_v61 = vadd.f32 %v7636_v22, %v2681_v38  ;;  %v3385_v11 = vadd.f32 %v7087_v19, %v3032_v36  ;;  %v2683_v14 = vadd.f32 %v7640_v56, %v7639_v33  ;;  %v7650_v4 = vmax.f32 %v7136_v44, 0.0 }
 0x2af   : > { %v7157_v62 = vadd.f32 %v6968_v6, %v3733_v13  ;;  %v3736_v37 = vadd.f32 %v5410_v12, %v3383_v18  ;;  %v3850_v42 = vsel %vm590_vm2, %v7542_v23, -inf  ;;  %v3853_v18 = vsel %vm590_vm2, %v7541_v63, -inf  ;;  %v3345_v23 = vpop.f32.mrf.mxu0 }
 0x2b0   : > { %v3668_v9 = vpop.f32.mrf.mxu1  ;;  %3851 = vmax.xlane.f32.xlu0 %v3850_v42  ;;  %v7543_v24 = vmax.f32 %v7147_v52, 0.0  ;;  %v3384_v12 = vadd.f32 %v3325_v30, %v3031_v29  ;;  %v7641_v42 = vld [vmem:[#allocation40_spill] sm:$0xff] }
 0x2b1   : > { %v7171_v1 = vadd.f32 %v6968_v6, %v3736_v37  ;;  %v3735_v15 = vadd.f32 %v3668_v9, %v3382_v45  ;;  %v3796_v13 = vmax.f32 %v7157_v62, 0.0  ;;  %v3033_v19 = vadd.f32 %v7641_v42, %v2680_v39  ;;  %v7642_v45 = vld [vmem:[#allocation42_spill] sm:$0xff]  ;;  %v7644_v9 = vld [vmem:[#allocation23_spill] sm:$0xff] }
 0x2b2   : > { %v5413_v38 = vpop.f32.mrf.mxu1  ;;  %3854 = vmax.xlane.f32.xlu1 %v3853_v18  ;;  %v3036_v10 = vadd.f32 %v7642_v45, %v2683_v14  ;;  %v2682_v63 = vadd.f32 %v7644_v9, %v7643_v26  ;;  %v3387_v18 = vadd.f32 %v5358_v47, %v3034_v61  ;;  %v7645_v14 = vld [vmem:[#allocation28_spill] sm:$0xff]  ;;  %v7647_v9 = vld [vmem:[#allocation29_spill] sm:$0xff] }
 0x2b3   : > { %v7179_v36 = vadd.f32 %v6968_v6, %v3735_v15  ;;  %v3738_v22 = vadd.f32 %v5413_v38, %v3385_v11  ;;  %v3856_v37 = vsel %vm590_vm2, %v3796_v13, -inf  ;;  %v3799_v30 = vmax.f32 %v7171_v1, 0.0  ;;  %v7646_v38 = vld [vmem:[#allocation25_spill] sm:$0xff] }
 0x2b4   : > { %v3678_v33 = vpop.f32.mrf.mxu1  ;;  %3857 = vmax.xlane.f32.xlu0 %v3856_v37  ;;  %v3859_v11 = vsel %vm590_vm2, %v7543_v24, -inf  ;;  %v3035_v56 = vadd.f32 %v6947_v20, %v2682_v63  ;;  %v2685_v42 = vadd.f32 %v7646_v38, %v7645_v14  ;;  %v3389_v37 = vadd.f32 %v5361_v2, %v3036_v10  ;;  %v5364_v63 = vpop.f32.mrf.mxu0 }
 0x2b5   : > { %v7189_v29 = vadd.f32 %v6968_v6, %v3738_v22  ;;  %v3737_v39 = vadd.f32 %v3678_v33, %v3384_v12  ;;  %v3798_v15 = vmax.f32 %v7179_v36, 0.0  ;;  %v3386_v22 = vadd.f32 %v3335_v25, %v3033_v19  ;;  %v7648_v33 = vld [vmem:[#allocation27_spill] sm:$0xff] }
 0x2b6   : > { %v5416_v45 = vpop.f32.mrf.mxu1  ;;  %3860 = vmax.xlane.f32.xlu1 %v3859_v11  ;;  %v3038_v26 = vadd.f32 %v6953_v31, %v2685_v42  ;;  %v2684_v20 = vadd.f32 %v7648_v33, %v7647_v9  ;;  %v3388_v10 = vadd.f32 %v3345_v23, %v3035_v56  ;;  %v7649_v11 = vld [vmem:[#allocation43_spill] sm:$0xff] }
 0x2b7   : > { %v7199_v47 = vadd.f32 %v6968_v6, %v3737_v39  ;;  %v3740_v61 = vadd.f32 %v5416_v45, %v3387_v18  ;;  %v3862_v12 = vsel %vm590_vm2, %v3798_v15, -inf  ;;  %v3865_v39 = vsel %vm590_vm2, %v3799_v30, -inf }
 0x2b8   : > { %v3688_v24 = vpop.f32.mrf.mxu1  ;;  %3863 = vmax.xlane.f32.xlu0 %v3862_v12  ;;  %v3801_v2 = vmax.f32 %v7189_v29, 0.0  ;;  %v3037_v14 = vadd.f32 %v7649_v11, %v2684_v20  ;;  %v3355_v12 = vpop.f32.mrf.mxu0 }
 0x2b9   : > { %v7211_v18 = vadd.f32 %v6968_v6, %v3740_v61  ;;  %v3739_v25 = vadd.f32 %v3688_v24, %v3386_v22  ;;  %v3800_v19 = vmax.f32 %v7199_v47, 0.0  ;;  %v3391_v61 = vadd.f32 %v5364_v63, %v3038_v26 }
 0x2ba   : > { %v5419_v31 = vpop.f32.mrf.mxu1  ;;  %3866 = vmax.xlane.f32.xlu1 %v3865_v39  ;;  %v3871_v9 = vsel %vm590_vm2, %v3801_v2, -inf  ;;  %v3390_v20 = vadd.f32 %v3355_v12, %v3037_v14 }
 0x2bb   : > { %v7217_v38 = vadd.f32 %v6968_v6, %v3739_v25  ;;  %v3742_v42 = vadd.f32 %v5419_v31, %v3389_v37  ;;  %v3868_v45 = vsel %vm590_vm2, %v3800_v19, -inf  ;;  %v3803_v22 = vmax.f32 %v7211_v18, 0.0 }
 0x2bc   : > { %v3698_v24 = vpop.f32.mrf.mxu1  ;;  %3869 = vmax.xlane.f32.xlu0 %v3868_v45 }
 0x2bd   : > { %v7224_v23 = vadd.f32 %v6968_v6, %v3742_v42  ;;  %v3741_v56 = vadd.f32 %v3698_v24, %v3388_v10  ;;  %v3802_v37 = vmax.f32 %v7217_v38, 0.0  ;;  %v3877_v10 = vsel %vm590_vm2, %v3803_v22, -inf }
 0x2be   : > { %v5422_v33 = vpop.f32.mrf.mxu1  ;;  %3872 = vmax.xlane.f32.xlu1 %v3871_v9 }
 0x2bf   : > { %v7231_v26 = vadd.f32 %v6968_v6, %v3741_v56  ;;  %v3744_v63 = vadd.f32 %v5422_v33, %v3391_v61  ;;  %v3874_v39 = vsel %vm590_vm2, %v3802_v37, -inf  ;;  %v3805_v42 = vmax.f32 %v7224_v23, 0.0 }
 0x2c0   : > { %v3708_v25 = vpop.f32.mrf.mxu1  ;;  %3875 = vmax.xlane.f32.xlu0 %v3874_v39 }
 0x2c1   : > { %v7240_v31 = vadd.f32 %v6968_v6, %v3744_v63  ;;  %v3743_v11 = vadd.f32 %v3708_v25, %v3390_v20  ;;  %v3804_v14 = vmax.f32 %v7231_v26, 0.0  ;;  %v3883_v12 = vsel %vm590_vm2, %v3805_v42, -inf }
 0x2c2   : > { %3878 = vmax.xlane.f32.xlu1 %v3877_v10 }
 0x2c3   : > { %v7245_v45 = vadd.f32 %v6968_v6, %v3743_v11  ;;  %v3880_v61 = vsel %vm590_vm2, %v3804_v14, -inf  ;;  %v3807_v56 = vmax.f32 %v7240_v31, 0.0 }
 0x2c4   : > { %3881 = vmax.xlane.f32.xlu0 %v3880_v61 }
 0x2c5   : > { %v3806_v24 = vmax.f32 %v7245_v45, 0.0  ;;  %v3889_v6 = vsel %vm590_vm2, %v3807_v56, -inf }
 0x2c6   : > { %3884 = vmax.xlane.f32.xlu1 %v3883_v12 }
 0x2c7   : > { %v3886_v9 = vsel %vm590_vm2, %v3806_v24, -inf }
 0x2c8   : > { %3887 = vmax.xlane.f32.xlu0 %v3886_v9 }
 0x2ca   : > { %3890 = vmax.xlane.f32.xlu1 %v3889_v6 }
 0x31b   : > { %v3813_v33 = vpop.xlane.xlu0 %3812 }
 0x31c   : > { %v3893_v20 = vsub.f32 %v3781_v27, %v3813_v33 }
 0x31e   : > { %v3922_v63 = vmul.f32 1.442695, %v3893_v20 }
 0x31f   : > { %v3819_v39 = vpop.xlane.xlu1 %3818  ;;  %v3810_v25 = vpop.xlane.xlu0 %3809 }
 0x320   : > { %5432 = vpow2.f32 %v3922_v63  ;;  %v3895_v10 = vsub.f32 %v3783_v16, %v3819_v39  ;;  %v3892_v11 = vsub.f32 %v3780_v41, %v3810_v25 }
 0x322   : > { %v3926_v61 = vmul.f32 1.442695, %v3895_v10  ;;  %v3920_v12 = vmul.f32 1.442695, %v3892_v11 }
 0x323   : > { %v3816_v9 = vpop.xlane.xlu1 %3815 }
 0x324   : > { %5434 = vpow2.f32 %v3926_v61  ;;  %v3894_v6 = vsub.f32 %v3782_v57, %v3816_v9 }
 0x325   : > { %5436 = vpow2.f32 %v3920_v12  ;;  %v3822_v49 = vpop.xlane.xlu0 %3821 }
 0x326   : > { %v3924_v27 = vmul.f32 1.442695, %v3894_v6  ;;  %v3896_v33 = vsub.f32 %v3784_v7, %v3822_v49 }
 0x327   : > { %v3825_v20 = vpop.xlane.xlu1 %3824 }
 0x328   : > { %5438 = vpow2.f32 %v3924_v27  ;;  %v3928_v51 = vmul.f32 1.442695, %v3896_v33  ;;  %v3897_v46 = vsub.f32 %v3785_v28, %v3825_v20 }
 0x329   : > { %v3828_v41 = vpop.xlane.xlu0 %3827 }
 0x32a   : > { %v3930_v16 = vmul.f32 1.442695, %v3897_v46  ;;  %v3898_v63 = vsub.f32 %v3786_v0, %v3828_v41  ;;  %5440 = vpow2.f32 %v3928_v51 }
 0x32b   : > { %v3831_v43 = vpop.xlane.xlu1 %3830 }
 0x32c   : > { %5442 = vpow2.f32 %v3930_v16  ;;  %v3932_v57 = vmul.f32 1.442695, %v3898_v63  ;;  %v3899_v39 = vsub.f32 %v3787_v55, %v3831_v43 }
 0x32d   : > { %v7277_v32 = vpop.eup %5432  ;;  %v3834_v7 = vpop.xlane.xlu0 %3833 }
 0x32e   : > { %v3934_v25 = vmul.f32 1.442695, %v3899_v39  ;;  %v3900_v54 = vsub.f32 %v3788_v8, %v3834_v7  ;;  %v3979_v28 = vsel %vm590_vm2, %v7277_v32, 0.0  ;;  %5444 = vpow2.f32 %v3932_v57 }
 0x32f   : > { %3980 = vadd.xlane.f32.xlu1 %v3979_v28  ;;  %v3837_v34 = vpop.xlane.xlu1 %3836 }
 0x330   : > { %5446 = vpow2.f32 %v3934_v25  ;;  %v3936_v0 = vmul.f32 1.442695, %v3900_v54  ;;  %v3901_v10 = vsub.f32 %v3789_v17, %v3837_v34 }
 0x331   : > { %v7285_v3 = vpop.eup %5434  ;;  %v3840_v55 = vpop.xlane.xlu0 %3839 }
 0x332   : > { %v7287_v11 = vpop.eup %5436  ;;  %v3938_v61 = vmul.f32 1.442695, %v3901_v10  ;;  %v3902_v60 = vsub.f32 %v3790_v53, %v3840_v55  ;;  %v3985_v8 = vsel %vm590_vm2, %v7285_v3, 0.0  ;;  %5448 = vpow2.f32 %v3936_v0 }
 0x333   : > { %3986 = vadd.xlane.f32.xlu1 %v3985_v8  ;;  %v3843_v12 = vpop.xlane.xlu1 %3842  ;;  %v3976_v9 = vsel %vm590_vm2, %v7287_v11, 0.0  ;;  %v7652_v55 = vmax.f32 %v7147_v52, 0.0 }
 0x334   : > { %5450 = vpow2.f32 %v3938_v61  ;;  %v3940_v5 = vmul.f32 1.442695, %v3902_v60  ;;  %v3903_v17 = vsub.f32 %v3791_v35, %v3843_v12  ;;  %3977 = vadd.xlane.f32.xlu0 %v3976_v9 }
 0x335   : > { %v7297_v6 = vpop.eup %5438  ;;  %v3846_v49 = vpop.xlane.xlu0 %3845 }
 0x336   : > { %v3942_v48 = vmul.f32 1.442695, %v3903_v17  ;;  %v3904_v53 = vsub.f32 %v3792_v40, %v3846_v49  ;;  %v3982_v27 = vsel %vm590_vm2, %v7297_v6, 0.0  ;;  %5452 = vpow2.f32 %v3940_v5 }
 0x337   : > { %v3849_v33 = vpop.xlane.xlu1 %3848  ;;  %v7303_v20 = vpop.eup %5440 }
 0x338   : > { %5454 = vpow2.f32 %v3942_v48  ;;  %v3944_v51 = vmul.f32 1.442695, %v3904_v53  ;;  %v3905_v50 = vsub.f32 %v3793_v58, %v3849_v33  ;;  %3983 = vadd.xlane.f32.xlu0 %v3982_v27  ;;  %v3988_v43 = vsel %vm590_vm2, %v7303_v20, 0.0 }
 0x339   : > { %v7307_v35 = vpop.eup %5442  ;;  %v3852_v46 = vpop.xlane.xlu0 %3851  ;;  %v7651_v58 = vmax.f32 %v7127_v59, 0.0 }
 0x33a   : > { %v3946_v41 = vmul.f32 1.442695, %v3905_v50  ;;  %v3906_v40 = vsub.f32 %v7650_v4, %v3852_v46  ;;  %v3991_v16 = vsel %vm590_vm2, %v7307_v35, 0.0  ;;  %5456 = vpow2.f32 %v3944_v51 }
 0x33b   : > { %3992 = vadd.xlane.f32.xlu1 %v3991_v16  ;;  %v3855_v63 = vpop.xlane.xlu1 %3854  ;;  %v7315_v57 = vpop.eup %5444 }
 0x33c   : > { %5458 = vpow2.f32 %v3946_v41  ;;  %v3948_v21 = vmul.f32 1.442695, %v3906_v40  ;;  %v3907_v39 = vsub.f32 %v7651_v58, %v3855_v63  ;;  %3989 = vadd.xlane.f32.xlu0 %v3988_v43  ;;  %v3994_v0 = vsel %vm590_vm2, %v7315_v57, 0.0 }
 0x33d   : > { %v7319_v7 = vpop.eup %5446  ;;  %v3858_v44 = vpop.xlane.xlu0 %3857 }
 0x33e   : > { %v3950_v25 = vmul.f32 1.442695, %v3907_v39  ;;  %v3908_v54 = vsub.f32 %v3796_v13, %v3858_v44  ;;  %v3997_v28 = vsel %vm590_vm2, %v7319_v7, 0.0  ;;  %5460 = vpow2.f32 %v3948_v21 }
 0x33f   : > { %3998 = vadd.xlane.f32.xlu1 %v3997_v28  ;;  %v3861_v34 = vpop.xlane.xlu1 %3860  ;;  %v7327_v10 = vpop.eup %5448 }
 0x340   : > { %5462 = vpow2.f32 %v3950_v25  ;;  %v3952_v59 = vmul.f32 1.442695, %v3908_v54  ;;  %v3909_v61 = vsub.f32 %v7652_v55, %v3861_v34  ;;  %3995 = vadd.xlane.f32.xlu0 %v3994_v0  ;;  %v4000_v5 = vsel %vm590_vm2, %v7327_v10, 0.0 }
 0x341   : > { %v7331_v60 = vpop.eup %5450  ;;  %v3864_v62 = vpop.xlane.xlu0 %3863 }
 0x342   : > { %v3954_v13 = vmul.f32 1.442695, %v3909_v61  ;;  %v3910_v8 = vsub.f32 %v3798_v15, %v3864_v62  ;;  %v4003_v12 = vsel %vm590_vm2, %v7331_v60, 0.0  ;;  %5464 = vpow2.f32 %v3952_v59 }
 0x343   : > { %4004 = vadd.xlane.f32.xlu1 %v4003_v12  ;;  %v3867_v9 = vpop.xlane.xlu1 %3866  ;;  %v7339_v17 = vpop.eup %5452 }
 0x344   : > { %5466 = vpow2.f32 %v3954_v13  ;;  %v3956_v52 = vmul.f32 1.442695, %v3910_v8  ;;  %v3911_v49 = vsub.f32 %v3799_v30, %v3867_v9  ;;  %4001 = vadd.xlane.f32.xlu0 %v4000_v5  ;;  %v4006_v51 = vsel %vm590_vm2, %v7339_v17, 0.0 }
 0x345   : > { %v7343_v48 = vpop.eup %5454  ;;  %v3870_v36 = vpop.xlane.xlu0 %3869 }
 0x346   : > { %v3958_v15 = vmul.f32 1.442695, %v3911_v49  ;;  %v3912_v53 = vsub.f32 %v3800_v19, %v3870_v36  ;;  %v4009_v27 = vsel %vm590_vm2, %v7343_v48, 0.0  ;;  %5468 = vpow2.f32 %v3956_v52 }
 0x347   : > { %4010 = vadd.xlane.f32.xlu1 %v4009_v27  ;;  %v3873_v33 = vpop.xlane.xlu1 %3872  ;;  %v7351_v50 = vpop.eup %5456 }
 0x348   : > { %5470 = vpow2.f32 %v3958_v15  ;;  %v3960_v1 = vmul.f32 1.442695, %v3912_v53  ;;  %v3913_v30 = vsub.f32 %v3801_v2, %v3873_v33  ;;  %4007 = vadd.xlane.f32.xlu0 %v4006_v51  ;;  %v4012_v16 = vsel %vm590_vm2, %v7351_v50, 0.0 }
 0x349   : > { %v7355_v46 = vpop.eup %5458  ;;  %v3876_v47 = vpop.xlane.xlu0 %3875 }
 0x34a   : > { %v3962_v19 = vmul.f32 1.442695, %v3913_v30  ;;  %v3914_v41 = vsub.f32 %v3802_v37, %v3876_v47  ;;  %v4015_v4 = vsel %vm590_vm2, %v7355_v46, 0.0  ;;  %5472 = vpow2.f32 %v3960_v1 }
 0x34b   : > { %4016 = vadd.xlane.f32.xlu1 %v4015_v4  ;;  %v3879_v40 = vpop.xlane.xlu1 %3878  ;;  %v7363_v63 = vpop.eup %5460 }
 0x34c   : > { %5474 = vpow2.f32 %v3962_v19  ;;  %v3964_v29 = vmul.f32 1.442695, %v3914_v41  ;;  %v3915_v2 = vsub.f32 %v3803_v22, %v3879_v40  ;;  %4013 = vadd.xlane.f32.xlu0 %v4012_v16  ;;  %v4018_v44 = vsel %vm590_vm2, %v7363_v63, 0.0 }
 0x34d   : > { %v7367_v43 = vpop.eup %5462  ;;  %v3882_v38 = vpop.xlane.xlu0 %3881 }
 0x34e   : > { %v3966_v37 = vmul.f32 1.442695, %v3915_v2  ;;  %v3916_v21 = vsub.f32 %v3804_v14, %v3882_v38  ;;  %v4021_v58 = vsel %vm590_vm2, %v7367_v43, 0.0  ;;  %5476 = vpow2.f32 %v3964_v29 }
 0x34f   : > { %4022 = vadd.xlane.f32.xlu1 %v4021_v58  ;;  %v3885_v39 = vpop.xlane.xlu1 %3884  ;;  %v7375_v25 = vpop.eup %5464 }
 0x350   : > { %5478 = vpow2.f32 %v3966_v37  ;;  %v3968_v18 = vmul.f32 1.442695, %v3916_v21  ;;  %v3917_v22 = vsub.f32 %v3805_v42, %v3885_v39  ;;  %4019 = vadd.xlane.f32.xlu0 %v4018_v44  ;;  %v4024_v59 = vsel %vm590_vm2, %v7375_v25, 0.0 }
 0x351   : > { %v7379_v54 = vpop.eup %5466  ;;  %v3888_v26 = vpop.xlane.xlu0 %3887 }
 0x352   : > { %v3970_v14 = vmul.f32 1.442695, %v3917_v22  ;;  %v3918_v28 = vsub.f32 %v3806_v24, %v3888_v26  ;;  %v4027_v34 = vsel %vm590_vm2, %v7379_v54, 0.0  ;;  %5480 = vpow2.f32 %v3968_v18 }
 0x353   : > { %4028 = vadd.xlane.f32.xlu1 %v4027_v34  ;;  %v3891_v0 = vpop.xlane.xlu1 %3890  ;;  %v7387_v55 = vpop.eup %5468 }
 0x354   : > { %5482 = vpow2.f32 %v3970_v14  ;;  %v3972_v23 = vmul.f32 1.442695, %v3918_v28  ;;  %v3919_v42 = vsub.f32 %v3807_v56, %v3891_v0  ;;  %4025 = vadd.xlane.f32.xlu0 %v4024_v59  ;;  %v4030_v62 = vsel %vm590_vm2, %v7387_v55, 0.0 }
 0x355   : > { %v7391_v61 = vpop.eup %5470 }
 0x356   : > { %v3974_v45 = vmul.f32 1.442695, %v3919_v42  ;;  %v4033_v24 = vsel %vm590_vm2, %v7391_v61, 0.0  ;;  %5484 = vpow2.f32 %v3972_v23 }
 0x357   : > { %4034 = vadd.xlane.f32.xlu1 %v4033_v24  ;;  %v7397_v13 = vpop.eup %5472 }
 0x358   : > { %5486 = vpow2.f32 %v3974_v45  ;;  %4031 = vadd.xlane.f32.xlu0 %v4030_v62  ;;  %v4036_v56 = vsel %vm590_vm2, %v7397_v13, 0.0 }
 0x359   : > { %v7399_v8 = vpop.eup %5474 }
 0x35a   : > { %v4039_v31 = vsel %vm590_vm2, %v7399_v8, 0.0 }
 0x35b   : > { %4040 = vadd.xlane.f32.xlu1 %v4039_v31  ;;  %v7405_v12 = vpop.eup %5476 }
 0x35c   : > { %4037 = vadd.xlane.f32.xlu0 %v4036_v56  ;;  %v4042_v52 = vsel %vm590_vm2, %v7405_v12, 0.0 }
 0x35d   : > { %v7407_v9 = vpop.eup %5478 }
 0x35e   : > { %v4045_v5 = vsel %vm590_vm2, %v7407_v9, 0.0 }
 0x35f   : > { %4046 = vadd.xlane.f32.xlu1 %v4045_v5  ;;  %v7413_v49 = vpop.eup %5480 }
 0x360   : > { %4043 = vadd.xlane.f32.xlu0 %v4042_v52  ;;  %v4048_v53 = vsel %vm590_vm2, %v7413_v49, 0.0 }
 0x361   : > { %v7415_v36 = vpop.eup %5482 }
 0x362   : > { %v4051_v15 = vsel %vm590_vm2, %v7415_v36, 0.0 }
 0x363   : > { %4052 = vadd.xlane.f32.xlu1 %v4051_v15  ;;  %v7421_v27 = vpop.eup %5484 }
 0x364   : > { %4049 = vadd.xlane.f32.xlu0 %v4048_v53  ;;  %v4054_v1 = vsel %vm590_vm2, %v7421_v27, 0.0 }
 0x365   : > { %v7423_v33 = vpop.eup %5486 }
 0x366   : > { %v4057_v51 = vsel %vm590_vm2, %v7423_v33, 0.0 }
 0x367   : > { %4058 = vadd.xlane.f32.xlu1 %v4057_v51 }
 0x368   : > { %4055 = vadd.xlane.f32.xlu0 %v4054_v1 }
 0x3b8   : > { %v3981_v30 = vpop.xlane.xlu1 %3980 }
 0x3b9   : > { %5488 = vrcp.f32 %v3981_v30 }
 0x3bc   : > { %v3987_v47 = vpop.xlane.xlu1 %3986 }
 0x3bd   : > { %5490 = vrcp.f32 %v3987_v47  ;;  %v3978_v19 = vpop.xlane.xlu0 %3977 }
 0x3be   : > { %5492 = vrcp.f32 %v3978_v19 }
 0x3c1   : > { %v3984_v41 = vpop.xlane.xlu0 %3983 }
 0x3c2   : > { %5494 = vrcp.f32 %v3984_v41 }
 0x3c4   : > { %v3993_v4 = vpop.xlane.xlu1 %3992 }
 0x3c5   : > { %5496 = vrcp.f32 %v3993_v4  ;;  %v3990_v40 = vpop.xlane.xlu0 %3989 }
 0x3c6   : > { %v5489_v16 = vpop.eup %5488  ;;  %5498 = vrcp.f32 %v3990_v40 }
 0x3c7   : > { %v4089_v29 = vmul.f32 %v5489_v16, %v7277_v32 }
 0x3c8   : > { %v3999_v2 = vpop.xlane.xlu1 %3998 }
 0x3c9   : > { %4117 = vst.msk [vmem:[%s7434_s30 + $0x8] sm:$0xff] %vm590_vm2, %v4089_v29  ;;  %5500 = vrcp.f32 %v3999_v2  ;;  %v3996_v38 = vpop.xlane.xlu0 %3995 }
 0x3ca   : > { %v5491_v37 = vpop.eup %5490  ;;  %5502 = vrcp.f32 %v3996_v38 }
 0x3cb   : > { %v5493_v21 = vpop.eup %5492  ;;  %v4091_v58 = vmul.f32 %v5491_v37, %v7285_v3 }
 0x3cc   : > { %v4088_v39 = vmul.f32 %v5493_v21, %v7287_v11  ;;  %v4005_v44 = vpop.xlane.xlu1 %4004 }
 0x3cd   : > { %4119 = vst.msk [vmem:[%s7434_s30 + $0x18] sm:$0xff] %vm590_vm2, %v4091_v58  ;;  %5504 = vrcp.f32 %v4005_v44  ;;  %v4002_v18 = vpop.xlane.xlu0 %4001 }
 0x3ce   : > { %4116 = vst.msk [vmem:[%s7434_s30] sm:$0xff] %vm590_vm2, %v4088_v39  ;;  %5506 = vrcp.f32 %v4002_v18 }
 0x3cf   : > { %v5495_v32 = vpop.eup %5494 }
 0x3d0   : > { %v4090_v22 = vmul.f32 %v5495_v32, %v7297_v6  ;;  %v4011_v26 = vpop.xlane.xlu1 %4010 }
 0x3d1   : > { %5508 = vrcp.f32 %v4011_v26  ;;  %v4008_v14 = vpop.xlane.xlu0 %4007 }
 0x3d2   : > { %v5497_v28 = vpop.eup %5496  ;;  %4118 = vst.msk [vmem:[%s7434_s30 + $0x10] sm:$0xff] %vm590_vm2, %v4090_v22  ;;  %5510 = vrcp.f32 %v4008_v14 }
 0x3d3   : > { %v5499_v3 = vpop.eup %5498  ;;  %v4093_v11 = vmul.f32 %v5497_v28, %v7307_v35 }
 0x3d4   : > { %v4092_v34 = vmul.f32 %v5499_v3, %v7303_v20  ;;  %v4017_v0 = vpop.xlane.xlu1 %4016 }
 0x3d5   : > { %4121 = vst.msk [vmem:[%s7434_s30 + $0x28] sm:$0xff] %vm590_vm2, %v4093_v11  ;;  %5512 = vrcp.f32 %v4017_v0  ;;  %v4014_v59 = vpop.xlane.xlu0 %4013 }
 0x3d6   : > { %v5501_v6 = vpop.eup %5500  ;;  %4120 = vst.msk [vmem:[%s7434_s30 + $0x20] sm:$0xff] %vm590_vm2, %v4092_v34  ;;  %5514 = vrcp.f32 %v4014_v59 }
 0x3d7   : > { %v5503_v23 = vpop.eup %5502  ;;  %v4095_v42 = vmul.f32 %v5501_v6, %v7319_v7 }
 0x3d8   : > { %v4094_v45 = vmul.f32 %v5503_v23, %v7315_v57  ;;  %v4023_v35 = vpop.xlane.xlu1 %4022 }
 0x3d9   : > { %4123 = vst.msk [vmem:[%s7434_s30 + $0x38] sm:$0xff] %vm590_vm2, %v4095_v42  ;;  %5516 = vrcp.f32 %v4023_v35  ;;  %v4020_v20 = vpop.xlane.xlu0 %4019 }
 0x3da   : > { %v5505_v24 = vpop.eup %5504  ;;  %4122 = vst.msk [vmem:[%s7434_s30 + $0x30] sm:$0xff] %vm590_vm2, %v4094_v45  ;;  %5518 = vrcp.f32 %v4020_v20 }
 0x3db   : > { %v5507_v62 = vpop.eup %5506  ;;  %v4097_v31 = vmul.f32 %v5505_v24, %v7331_v60 }
 0x3dc   : > { %v4096_v56 = vmul.f32 %v5507_v62, %v7327_v10  ;;  %v4029_v7 = vpop.xlane.xlu1 %4028 }
 0x3dd   : > { %4125 = vst.msk [vmem:[%s7434_s30 + $0x48] sm:$0xff] %vm590_vm2, %v4097_v31  ;;  %5520 = vrcp.f32 %v4029_v7  ;;  %v4026_v57 = vpop.xlane.xlu0 %4025 }
 0x3de   : > { %v5509_v5 = vpop.eup %5508  ;;  %4124 = vst.msk [vmem:[%s7434_s30 + $0x40] sm:$0xff] %vm590_vm2, %v4096_v56  ;;  %5522 = vrcp.f32 %v4026_v57 }
 0x3df   : > { %v5511_v52 = vpop.eup %5510  ;;  %v4099_v15 = vmul.f32 %v5509_v5, %v7343_v48 }
 0x3e0   : > { %v4098_v53 = vmul.f32 %v5511_v52, %v7339_v17  ;;  %v4035_v60 = vpop.xlane.xlu1 %4034 }
 0x3e1   : > { %4127 = vst.msk [vmem:[%s7434_s30 + $0x58] sm:$0xff] %vm590_vm2, %v4099_v15  ;;  %5524 = vrcp.f32 %v4035_v60  ;;  %v4032_v10 = vpop.xlane.xlu0 %4031 }
 0x3e2   : > { %v5513_v51 = vpop.eup %5512  ;;  %4126 = vst.msk [vmem:[%s7434_s30 + $0x50] sm:$0xff] %vm590_vm2, %v4098_v53  ;;  %5526 = vrcp.f32 %v4032_v10 }
 0x3e3   : > { %v5515_v1 = vpop.eup %5514  ;;  %v4101_v30 = vmul.f32 %v5513_v51, %v7355_v46 }
 0x3e4   : > { %v4100_v47 = vmul.f32 %v5515_v1, %v7351_v50  ;;  %v4041_v48 = vpop.xlane.xlu1 %4040 }
 0x3e5   : > { %4129 = vst.msk [vmem:[%s7434_s30 + $0x68] sm:$0xff] %vm590_vm2, %v4101_v30  ;;  %5528 = vrcp.f32 %v4041_v48  ;;  %v4038_v17 = vpop.xlane.xlu0 %4037 }
 0x3e6   : > { %v5517_v19 = vpop.eup %5516  ;;  %4128 = vst.msk [vmem:[%s7434_s30 + $0x60] sm:$0xff] %vm590_vm2, %v4100_v47  ;;  %5530 = vrcp.f32 %v4038_v17 }
 0x3e7   : > { %v5519_v41 = vpop.eup %5518  ;;  %v4103_v4 = vmul.f32 %v5517_v19, %v7367_v43 }
 0x3e8   : > { %v4102_v40 = vmul.f32 %v5519_v41, %v7363_v63  ;;  %v4047_v46 = vpop.xlane.xlu1 %4046 }
 0x3e9   : > { %4131 = vst.msk [vmem:[%s7434_s30 + $0x78] sm:$0xff] %vm590_vm2, %v4103_v4  ;;  %5532 = vrcp.f32 %v4047_v46  ;;  %v4044_v50 = vpop.xlane.xlu0 %4043 }
 0x3ea   : > { %v5521_v16 = vpop.eup %5520  ;;  %4130 = vst.msk [vmem:[%s7434_s30 + $0x70] sm:$0xff] %vm590_vm2, %v4102_v40  ;;  %5534 = vrcp.f32 %v4044_v50 }
 0x3eb   : > { %v5523_v29 = vpop.eup %5522  ;;  %v4105_v2 = vmul.f32 %v5521_v16, %v7379_v54 }
 0x3ec   : > { %v4104_v38 = vmul.f32 %v5523_v29, %v7375_v25  ;;  %v4053_v43 = vpop.xlane.xlu1 %4052 }
 0x3ed   : > { %4133 = vst.msk [vmem:[%s7434_s30 + $0x88] sm:$0xff] %vm590_vm2, %v4105_v2  ;;  %5536 = vrcp.f32 %v4053_v43  ;;  %v4050_v63 = vpop.xlane.xlu0 %4049 }
 0x3ee   : > { %v5525_v37 = vpop.eup %5524  ;;  %4132 = vst.msk [vmem:[%s7434_s30 + $0x80] sm:$0xff] %vm590_vm2, %v4104_v38  ;;  %5538 = vrcp.f32 %v4050_v63 }
 0x3ef   : > { %v5527_v21 = vpop.eup %5526  ;;  %v4107_v58 = vmul.f32 %v5525_v37, %v7391_v61 }
 0x3f0   : > { %v4106_v39 = vmul.f32 %v5527_v21, %v7387_v55  ;;  %v4059_v54 = vpop.xlane.xlu1 %4058 }
 0x3f1   : > { %4135 = vst.msk [vmem:[%s7434_s30 + $0x98] sm:$0xff] %vm590_vm2, %v4107_v58  ;;  %5540 = vrcp.f32 %v4059_v54  ;;  %v4056_v25 = vpop.xlane.xlu0 %4055 }
 0x3f2   : > { %v5529_v44 = vpop.eup %5528  ;;  %4134 = vst.msk [vmem:[%s7434_s30 + $0x90] sm:$0xff] %vm590_vm2, %v4106_v39  ;;  %5542 = vrcp.f32 %v4056_v25 }
 0x3f3   : > { %v5531_v18 = vpop.eup %5530  ;;  %v4109_v32 = vmul.f32 %v5529_v44, %v7399_v8 }
 0x3f4   : > { %v4108_v61 = vmul.f32 %v5531_v18, %v7397_v13 }
 0x3f5   : > { %4137 = vst.msk [vmem:[%s7434_s30 + $0xa8] sm:$0xff] %vm590_vm2, %v4109_v32 }
 0x3f6   : > { %v5533_v55 = vpop.eup %5532  ;;  %4136 = vst.msk [vmem:[%s7434_s30 + $0xa0] sm:$0xff] %vm590_vm2, %v4108_v61 }
 0x3f7   : > { %v5535_v22 = vpop.eup %5534  ;;  %v4111_v26 = vmul.f32 %v5533_v55, %v7407_v9 }
 0x3f8   : > { %v4110_v14 = vmul.f32 %v5535_v22, %v7405_v12 }
 0x3f9   : > { %4139 = vst.msk [vmem:[%s7434_s30 + $0xb8] sm:$0xff] %vm590_vm2, %v4111_v26 }
 0x3fa   : > { %v5537_v28 = vpop.eup %5536  ;;  %4138 = vst.msk [vmem:[%s7434_s30 + $0xb0] sm:$0xff] %vm590_vm2, %v4110_v14 }
 0x3fb   : > { %v5539_v8 = vpop.eup %5538  ;;  %v4113_v13 = vmul.f32 %v5537_v28, %v7415_v36 }
 0x3fc   : > { %v4112_v3 = vmul.f32 %v5539_v8, %v7413_v49 }
 0x3fd   : > { %4141 = vst.msk [vmem:[%s7434_s30 + $0xc8] sm:$0xff] %vm590_vm2, %v4113_v13 }
 0x3fe   : > { %v5541_v11 = vpop.eup %5540  ;;  %4140 = vst.msk [vmem:[%s7434_s30 + $0xc0] sm:$0xff] %vm590_vm2, %v4112_v3 }
 0x3ff   : > { %v5543_v34 = vpop.eup %5542  ;;  %v4115_v9 = vmul.f32 %v5541_v11, %v7423_v33 }
 0x400   : > { %v4114_v12 = vmul.f32 %v5543_v34, %v7421_v27 }
 0x401   : > { %4143 = vst.msk [vmem:[%s7434_s30 + $0xd8] sm:$0xff] %vm590_vm2, %v4115_v9 }
 0x402   : > { %4142 = vst.msk [vmem:[%s7434_s30 + $0xd0] sm:$0xff] %vm590_vm2, %v4114_v12 }
 0x403 PF: > { %s15_s18 = sadd.s32 1, %s5550_s18  }
 0x404   : > { %p12_p4 = scmp.ge.s32.totalorder %s15_s18, 4  }
 0x406   :  { %14 = sbr.rel (!%p12_p4) target bundleno = 1 (0x1), region = 70 }

</bundles_post_ra>
